<compile_context>
chip_gen: v7x
topology: tpu7x:2x2x1
jax: 0.10.0
libtpu: 0.0.40
codegen_flags: <defaults>
</compile_context>

<pallas_src>
import math
import numpy as np
import jax
import jax.numpy as jnp
from jax import lax
from jax.experimental import pallas as pl
from jax.experimental.pallas import tpu as pltpu

# ---------------- config (small, consistent with the module) ----------------
B = 2            # batch
H_DIM = 32       # h_dim
N_HEADS = 4      # n_heads
HEAD_DIM = H_DIM // N_HEADS
MAX_T = 12       # max_T (divisible by 3 for the block-causal mask)
T = MAX_T        # sequence length used at call time (<= MAX_T)
MLP_DIM = 4 * H_DIM
LN_EPS = 1e-5
NEG_BIG = -1e30  # additive-mask constant (safer than -inf)


# ----------------------------- kernel helpers --------------------------------
def _layernorm(v, w, b):
    mu = jnp.mean(v, axis=-1, keepdims=True)
    var = jnp.mean((v - mu) ** 2, axis=-1, keepdims=True)
    return (v - mu) * lax.rsqrt(var + LN_EPS) * w + b


def _gelu_exact(v):
    # PyTorch nn.GELU() default: exact erf formulation.
    return 0.5 * v * (1.0 + lax.erf(v * (1.0 / math.sqrt(2.0))))


# ----------------------------- Pallas kernel ---------------------------------
def block_kernel(mask_ref, x_ref, wqkv_ref, bqkv_ref, wp_ref,
                 w1_ref, b1_ref, w2_ref, vecs_ref,
                 out_ref, attw_ref, mlp_ref, att_scratch):
    C = H_DIM
    x = x_ref[...]               # (B*T, C)  whole batch, flattened
    add_mask = mask_ref[...]     # (T, T)    additive mask: 0 (keep) / -1e30 (masked)
    vecs = vecs_ref[...]         # (6, C)    packed small vectors (one vreg)
    bp, ln1w, ln1b = vecs[0:1], vecs[1:2], vecs[2:3]
    b2, ln2w, ln2b = vecs[3:4], vecs[4:5], vecs[5:6]

    # Fused Q/K/V projection for the whole batch: one MXU matmul.
    # (q columns/bias were pre-scaled by 1/sqrt(HEAD_DIM) in the wrapper.)
    qkv = jnp.dot(x, wqkv_ref[...], preferred_element_type=jnp.float32) + bqkv_ref[...]

    # Attention: short static loops over batch and heads (per-batch softmax).
    for b in range(B):
        r0 = b * T
        qkv_b = qkv[r0:r0 + T, :]                    # (T, 3C)
        for h in range(N_HEADS):
            lo = h * HEAD_DIM
            qh = qkv_b[:, lo:lo + HEAD_DIM]          # (T, D) -- already scaled
            kh = qkv_b[:, C + lo:C + lo + HEAD_DIM]
            vh = qkv_b[:, 2 * C + lo:2 * C + lo + HEAD_DIM]
            s = lax.dot_general(qh, kh, (((1,), (1,)), ((), ())),
                                preferred_element_type=jnp.float32)
            s = s + add_mask                         # hoisted additive mask
            m = jnp.max(s, axis=-1, keepdims=True)
            e = jnp.exp(s - m)
            p = e * pl.reciprocal(jnp.sum(e, axis=-1, keepdims=True), approx=True)
            attw_ref[b, h, :, :] = p
            # Collect per-head attention output; projection done once afterwards.
            att_scratch[r0:r0 + T, lo:lo + HEAD_DIM] = jnp.dot(
                p, vh, preferred_element_type=jnp.float32)

    # Single output projection over the whole batch.
    att_out = jnp.dot(att_scratch[...], wp_ref[...],
                      preferred_element_type=jnp.float32) + bp

    # residual + LayerNorm 1
    x1 = _layernorm(x + att_out, ln1w, ln1b)

    # MLP
    h1 = _gelu_exact(jnp.dot(x1, w1_ref[...],
                             preferred_element_type=jnp.float32) + b1_ref[...])
    mlp_ref[...] = h1                                # (B*T, 4C) mlp activations
    h2 = jnp.dot(h1, w2_ref[...], preferred_element_type=jnp.float32) + b2

    # residual + LayerNorm 2
    out_ref[...] = _layernorm(x1 + h2, ln2w, ln2b)


# ------------------------------- wrapper --------------------------------------
def prepare_params(torch_params):
    """torch_params are PyTorch-convention (out,in) weights and (1,out) biases."""
    (wq, bq, wk, bk, wv, bv, wp, bp,
     ln1w, ln1b, w1, b1, w2, b2, ln2w, ln2b) = torch_params
    scale = 1.0 / math.sqrt(HEAD_DIM)
    w_qkv = jnp.concatenate([wq.T * scale, wk.T, wv.T], axis=1)      # (C, 3C)
    b_qkv = jnp.concatenate([bq * scale, bk, bv], axis=1)            # (1, 3C)
    vecs = jnp.concatenate([bp, ln1w, ln1b, b2, ln2w, ln2b], axis=0)  # (6, C)
    return (w_qkv, b_qkv, wp.T, w1.T, b1, w2.T, vecs)


def block_forward(x, prepped, add_mask):
    Bn, Tn, Cn = x.shape
    w_qkv, b_qkv, wp_t, w1_t, b1, w2_t, vecs = prepped
    x2d = x.reshape(Bn * Tn, Cn)   # free reshape outside the kernel

    def zmap(ndim):
        return lambda i: (0,) * ndim

    args = (add_mask, x2d, w_qkv, b_qkv, wp_t, w1_t, b1, w2_t, vecs)
    in_specs = [pl.BlockSpec(a.shape, zmap(a.ndim)) for a in args]
    out_specs = (
        pl.BlockSpec((Bn * Tn, Cn), zmap(2)),
        pl.BlockSpec((Bn, N_HEADS, Tn, Tn), zmap(4)),
        pl.BlockSpec((Bn * Tn, MLP_DIM), zmap(2)),
    )
    out_shape = (
        jax.ShapeDtypeStruct((Bn * Tn, Cn), jnp.float32),
        jax.ShapeDtypeStruct((Bn, N_HEADS, Tn, Tn), jnp.float32),
        jax.ShapeDtypeStruct((Bn * Tn, MLP_DIM), jnp.float32),
    )
    out2d, attw, mlp2d = pl.pallas_call(
        block_kernel,
        out_shape=out_shape,
        grid=(1,),                       # whole problem in one grid step
        in_specs=in_specs,
        out_specs=out_specs,
        scratch_shapes=[pltpu.VMEM((Bn * Tn, Cn), jnp.float32)],
        compiler_params=pltpu.CompilerParams(dimension_semantics=("arbitrary",)),
    )(*args)
    return out2d.reshape(Bn, Tn, Cn), attw, mlp2d.reshape(Bn, Tn, MLP_DIM)


# --------------------------- pure-JAX reference --------------------------------
def ref_forward(x, torch_params, mask):
    (wq, bq, wk, bk, wv, bv, wp, bp,
     ln1w, ln1b, w1, b1, w2, b2, ln2w, ln2b) = torch_params
    Bn, Tn, Cn = x.shape
    D = Cn // N_HEADS

    def lin(v, w, b):
        return v @ w.T + b

    q = lin(x, wq, bq).reshape(Bn, Tn, N_HEADS, D).transpose(0, 2, 1, 3)
    k = lin(x, wk, bk).reshape(Bn, Tn, N_HEADS, D).transpose(0, 2, 1, 3)
    v = lin(x, wv, bv).reshape(Bn, Tn, N_HEADS, D).transpose(0, 2, 1, 3)
    s = (q @ k.transpose(0, 1, 3, 2)) / math.sqrt(D)
    s = jnp.where(mask[None, None] > 0, s, -jnp.inf)
    w_att = jax.nn.softmax(s, axis=-1)
    a = (w_att @ v).transpose(0, 2, 1, 3).reshape(Bn, Tn, Cn)
    att_out = lin(a, wp, bp)

    def ln(v, g, beta):
        mu = jnp.mean(v, axis=-1, keepdims=True)
        var = jnp.mean((v - mu) ** 2, axis=-1, keepdims=True)
        return (v - mu) / jnp.sqrt(var + LN_EPS) * g + beta

    x1 = ln(x + att_out, ln1w, ln1b)
    pre = lin(x1, w1, b1)
    h = 0.5 * pre * (1.0 + lax.erf(pre / math.sqrt(2.0)))
    x2 = ln(x1 + lin(h, w2, b2), ln2w, ln2b)
    return x2, w_att, h


# ------------------------------ mask helper ------------------------------------
def block_causal_mask(max_T):
    blocks = np.kron(np.eye(max_T // 3), np.ones((3, 3)))
    tril = np.tril(np.ones((max_T, max_T)))
    return np.logical_or(blocks, tril).astype(np.float32)


# ---------------------------------- main ----------------------------------------
if __name__ == "__main__":
    key = jax.random.PRNGKey(0)
    keys = jax.random.split(key, 16)

    def w(k, shape, scale=0.02):
        return jax.random.normal(k, shape, jnp.float32) * scale

    C = H_DIM
    # PyTorch-convention weights (out, in) / biases (1, out).
    wq = w(keys[0], (C, C)); bq = w(keys[1], (1, C), 0.01)
    wk = w(keys[2], (C, C)); bk = w(keys[3], (1, C), 0.01)
    wv = w(keys[4], (C, C)); bv = w(keys[5], (1, C), 0.01)
    wp = w(keys[6], (C, C)); bp = w(keys[7], (1, C), 0.01)
    w1 = w(keys[8], (MLP_DIM, C)); b1 = w(keys[9], (1, MLP_DIM), 0.01)
    w2 = w(keys[10], (C, MLP_DIM)); b2 = w(keys[11], (1, C), 0.01)
    ln1w = jnp.ones((1, C), jnp.float32); ln1b = jnp.zeros((1, C), jnp.float32)
    ln2w = jnp.ones((1, C), jnp.float32); ln2b = jnp.zeros((1, C), jnp.float32)

    torch_params = (wq, bq, wk, bk, wv, bv, wp, bp,
                    ln1w, ln1b, w1, b1, w2, b2, ln2w, ln2b)

    x = jax.random.normal(keys[12], (B, T, H_DIM), jnp.float32)
    mask = jnp.asarray(block_causal_mask(MAX_T)[:T, :T])          # binary mask (ref)
    add_mask = jnp.where(mask > 0, 0.0, NEG_BIG).astype(jnp.float32)  # additive (kernel)

    prepped = prepare_params(torch_params)
    out, attw, mlp_act = jax.block_until_ready(block_forward(x, prepped, add_mask))

    ref_out, ref_w, ref_h = ref_forward(x, torch_params, mask)
    # tolerance 1e-3 to accommodate the approx-EUP reciprocal in the softmax.
    np.testing.assert_allclose(np.asarray(out), np.asarray(ref_out), atol=1e-3, rtol=1e-3)
    np.testing.assert_allclose(np.asarray(attw), np.asarray(ref_w), atol=1e-3, rtol=1e-3)
    np.testing.assert_allclose(np.asarray(mlp_act), np.asarray(ref_h), atol=1e-3, rtol=1e-3)

    print("KERNEL_OK")
</pallas_src>

<mosaic_0001>
module attributes {stable_mosaic.version = 11 : i64} {
  func.func @block_kernel(%arg0: i32, %arg1: memref<12x12xf32, #tpu.memory_space<vmem>>, %arg2: memref<24x32xf32, #tpu.memory_space<vmem>>, %arg3: memref<32x96xf32, #tpu.memory_space<vmem>>, %arg4: memref<1x96xf32, #tpu.memory_space<vmem>>, %arg5: memref<32x32xf32, #tpu.memory_space<vmem>>, %arg6: memref<32x128xf32, #tpu.memory_space<vmem>>, %arg7: memref<1x128xf32, #tpu.memory_space<vmem>>, %arg8: memref<128x32xf32, #tpu.memory_space<vmem>>, %arg9: memref<6x32xf32, #tpu.memory_space<vmem>>, %arg10: memref<24x32xf32, #tpu.memory_space<vmem>>, %arg11: memref<2x4x12x12xf32, #tpu.memory_space<vmem>>, %arg12: memref<24x128xf32, #tpu.memory_space<vmem>>, %arg13: memref<24x32xf32, #tpu.memory_space<vmem>>) attributes {dimension_semantics = [#tpu.dimension_semantics<arbitrary>], iteration_bounds = array<i64: 1>, scalar_prefetch = 0 : i64, scratch_operands = 1 : i64, tpu.core_type = #tpu.core_type<tc>, window_params = [{pipeline_mode = #tpu.pipeline_mode<synchronous>, transform_indices = @transform_0, window_bounds = array<i64: 12, 12>}, {pipeline_mode = #tpu.pipeline_mode<synchronous>, transform_indices = @transform_1, window_bounds = array<i64: 24, 32>}, {pipeline_mode = #tpu.pipeline_mode<synchronous>, transform_indices = @transform_2, window_bounds = array<i64: 32, 96>}, {pipeline_mode = #tpu.pipeline_mode<synchronous>, transform_indices = @transform_3, window_bounds = array<i64: 1, 96>}, {pipeline_mode = #tpu.pipeline_mode<synchronous>, transform_indices = @transform_4, window_bounds = array<i64: 32, 32>}, {pipeline_mode = #tpu.pipeline_mode<synchronous>, transform_indices = @transform_5, window_bounds = array<i64: 32, 128>}, {pipeline_mode = #tpu.pipeline_mode<synchronous>, transform_indices = @transform_6, window_bounds = array<i64: 1, 128>}, {pipeline_mode = #tpu.pipeline_mode<synchronous>, transform_indices = @transform_7, window_bounds = array<i64: 128, 32>}, {pipeline_mode = #tpu.pipeline_mode<synchronous>, transform_indices = @transform_8, window_bounds = array<i64: 6, 32>}, {pipeline_mode = #tpu.pipeline_mode<synchronous>, transform_indices = @transform_9, window_bounds = array<i64: 24, 32>}, {pipeline_mode = #tpu.pipeline_mode<synchronous>, transform_indices = @transform_10, window_bounds = array<i64: 2, 4, 12, 12>}, {pipeline_mode = #tpu.pipeline_mode<synchronous>, transform_indices = @transform_11, window_bounds = array<i64: 24, 128>}]} {
    %c0 = arith.constant 0 : index
    %c0_0 = arith.constant 0 : index
    %0 = vector.load %arg2[%c0, %c0_0] : memref<24x32xf32, #tpu.memory_space<vmem>>, vector<24x32xf32>
    %c0_1 = arith.constant 0 : index
    %c0_2 = arith.constant 0 : index
    %1 = vector.load %arg1[%c0_1, %c0_2] : memref<12x12xf32, #tpu.memory_space<vmem>>, vector<12x12xf32>
    %c0_3 = arith.constant 0 : index
    %c0_4 = arith.constant 0 : index
    %2 = vector.load %arg9[%c0_3, %c0_4] : memref<6x32xf32, #tpu.memory_space<vmem>>, vector<6x32xf32>
    %3 = vector.extract_strided_slice %2 {offsets = [0, 0], sizes = [1, 32], strides = [1, 1]} : vector<6x32xf32> to vector<1x32xf32>
    %4 = vector.extract_strided_slice %2 {offsets = [1, 0], sizes = [1, 32], strides = [1, 1]} : vector<6x32xf32> to vector<1x32xf32>
    %5 = vector.extract_strided_slice %2 {offsets = [2, 0], sizes = [1, 32], strides = [1, 1]} : vector<6x32xf32> to vector<1x32xf32>
    %6 = vector.extract_strided_slice %2 {offsets = [3, 0], sizes = [1, 32], strides = [1, 1]} : vector<6x32xf32> to vector<1x32xf32>
    %7 = vector.extract_strided_slice %2 {offsets = [4, 0], sizes = [1, 32], strides = [1, 1]} : vector<6x32xf32> to vector<1x32xf32>
    %8 = vector.extract_strided_slice %2 {offsets = [5, 0], sizes = [1, 32], strides = [1, 1]} : vector<6x32xf32> to vector<1x32xf32>
    %c0_5 = arith.constant 0 : index
    %c0_6 = arith.constant 0 : index
    %9 = vector.load %arg3[%c0_5, %c0_6] : memref<32x96xf32, #tpu.memory_space<vmem>>, vector<32x96xf32>
    %cst = arith.constant dense<0.000000e+00> : vector<24x96xf32>
    %10 = tpu.matmul %0, %9, %cst {dimension_numbers = #tpu.dot_dimension_numbers<[1], [0], [0], [1], [0, 0, 1, 1], [], []>} : vector<24x32xf32>, vector<32x96xf32>, vector<24x96xf32> -> vector<24x96xf32>
    %c0_7 = arith.constant 0 : index
    %c0_8 = arith.constant 0 : index
    %11 = vector.load %arg4[%c0_7, %c0_8] : memref<1x96xf32, #tpu.memory_space<vmem>>, vector<1x96xf32>
    %12 = vector.broadcast %11 : vector<1x96xf32> to vector<24x96xf32>
    %13 = arith.addf %10, %12 : vector<24x96xf32>
    %14 = vector.extract_strided_slice %13 {offsets = [0, 0], sizes = [12, 96], strides = [1, 1]} : vector<24x96xf32> to vector<12x96xf32>
    %15 = vector.extract_strided_slice %14 {offsets = [0, 0], sizes = [12, 8], strides = [1, 1]} : vector<12x96xf32> to vector<12x8xf32>
    %16 = vector.extract_strided_slice %14 {offsets = [0, 32], sizes = [12, 8], strides = [1, 1]} : vector<12x96xf32> to vector<12x8xf32>
    %17 = vector.extract_strided_slice %14 {offsets = [0, 64], sizes = [12, 8], strides = [1, 1]} : vector<12x96xf32> to vector<12x8xf32>
    %cst_9 = arith.constant dense<0.000000e+00> : vector<12x12xf32>
    %18 = tpu.matmul %15, %16, %cst_9 {dimension_numbers = #tpu.dot_dimension_numbers<[1], [1], [0], [0], [0, 0, 1, 0], [], []>} : vector<12x8xf32>, vector<12x8xf32>, vector<12x12xf32> -> vector<12x12xf32>
    %19 = arith.addf %18, %1 : vector<12x12xf32>
    %cst_10 = arith.constant dense<0xFF800000> : vector<12xf32>
    %20 = vector.multi_reduction <maximumf>, %19, %cst_10 [1] : vector<12x12xf32> to vector<12xf32>
    %21 = vector.shape_cast %20 : vector<12xf32> to vector<12x1xf32>
    %22 = vector.broadcast %21 : vector<12x1xf32> to vector<12x12xf32>
    %23 = arith.subf %19, %22 : vector<12x12xf32>
    %24 = math.exp %23 : vector<12x12xf32>
    %cst_11 = arith.constant dense<0.000000e+00> : vector<12xf32>
    %25 = vector.multi_reduction <add>, %24, %cst_11 [1] : vector<12x12xf32> to vector<12xf32>
    %26 = vector.shape_cast %25 : vector<12xf32> to vector<12x1xf32>
    %27 = tpu.reciprocal %26 {approx = true} : vector<12x1xf32> -> vector<12x1xf32>
    %28 = vector.broadcast %27 : vector<12x1xf32> to vector<12x12xf32>
    %29 = arith.mulf %24, %28 : vector<12x12xf32>
    %c0_12 = arith.constant 0 : index
    %c0_13 = arith.constant 0 : index
    %c0_14 = arith.constant 0 : index
    %c0_15 = arith.constant 0 : index
    %30 = vector.load %arg11[%c0_12, %c0_13, %c0_14, %c0_15] : memref<2x4x12x12xf32, #tpu.memory_space<vmem>>, vector<1x1x12x12xf32>
    %31 = vector.shape_cast %30 : vector<1x1x12x12xf32> to vector<12x12xf32>
    %32 = vector.shape_cast %29 : vector<12x12xf32> to vector<1x1x12x12xf32>
    tpu.vector_store %arg11[%c0_12, %c0_13, %c0_14, %c0_15], %32 {strides = array<i32>} : memref<2x4x12x12xf32, #tpu.memory_space<vmem>>, vector<1x1x12x12xf32>,
    %cst_16 = arith.constant dense<0.000000e+00> : vector<12x8xf32>
    %33 = tpu.matmul %29, %17, %cst_16 {dimension_numbers = #tpu.dot_dimension_numbers<[1], [0], [0], [1], [0, 0, 1, 1], [], []>} : vector<12x12xf32>, vector<12x8xf32>, vector<12x8xf32> -> vector<12x8xf32>
    %c0_17 = arith.constant 0 : index
    %c0_18 = arith.constant 0 : index
    %34 = vector.load %arg13[%c0_17, %c0_18] : memref<24x32xf32, #tpu.memory_space<vmem>>, vector<12x8xf32>
    tpu.vector_store %arg13[%c0_17, %c0_18], %33 {strides = array<i32>} : memref<24x32xf32, #tpu.memory_space<vmem>>, vector<12x8xf32>,
    %35 = vector.extract_strided_slice %14 {offsets = [0, 8], sizes = [12, 8], strides = [1, 1]} : vector<12x96xf32> to vector<12x8xf32>
    %36 = vector.extract_strided_slice %14 {offsets = [0, 40], sizes = [12, 8], strides = [1, 1]} : vector<12x96xf32> to vector<12x8xf32>
    %37 = vector.extract_strided_slice %14 {offsets = [0, 72], sizes = [12, 8], strides = [1, 1]} : vector<12x96xf32> to vector<12x8xf32>
    %cst_19 = arith.constant dense<0.000000e+00> : vector<12x12xf32>
    %38 = tpu.matmul %35, %36, %cst_19 {dimension_numbers = #tpu.dot_dimension_numbers<[1], [1], [0], [0], [0, 0, 1, 0], [], []>} : vector<12x8xf32>, vector<12x8xf32>, vector<12x12xf32> -> vector<12x12xf32>
    %39 = arith.addf %38, %1 : vector<12x12xf32>
    %cst_20 = arith.constant dense<0xFF800000> : vector<12xf32>
    %40 = vector.multi_reduction <maximumf>, %39, %cst_20 [1] : vector<12x12xf32> to vector<12xf32>
    %41 = vector.shape_cast %40 : vector<12xf32> to vector<12x1xf32>
    %42 = vector.broadcast %41 : vector<12x1xf32> to vector<12x12xf32>
    %43 = arith.subf %39, %42 : vector<12x12xf32>
    %44 = math.exp %43 : vector<12x12xf32>
    %cst_21 = arith.constant dense<0.000000e+00> : vector<12xf32>
    %45 = vector.multi_reduction <add>, %44, %cst_21 [1] : vector<12x12xf32> to vector<12xf32>
    %46 = vector.shape_cast %45 : vector<12xf32> to vector<12x1xf32>
    %47 = tpu.reciprocal %46 {approx = true} : vector<12x1xf32> -> vector<12x1xf32>
    %48 = vector.broadcast %47 : vector<12x1xf32> to vector<12x12xf32>
    %49 = arith.mulf %44, %48 : vector<12x12xf32>
    %c0_22 = arith.constant 0 : index
    %c1 = arith.constant 1 : index
    %c0_23 = arith.constant 0 : index
    %c0_24 = arith.constant 0 : index
    %50 = vector.load %arg11[%c0_22, %c1, %c0_23, %c0_24] : memref<2x4x12x12xf32, #tpu.memory_space<vmem>>, vector<1x1x12x12xf32>
    %51 = vector.shape_cast %50 : vector<1x1x12x12xf32> to vector<12x12xf32>
    %52 = vector.shape_cast %49 : vector<12x12xf32> to vector<1x1x12x12xf32>
    tpu.vector_store %arg11[%c0_22, %c1, %c0_23, %c0_24], %52 {strides = array<i32>} : memref<2x4x12x12xf32, #tpu.memory_space<vmem>>, vector<1x1x12x12xf32>,
    %cst_25 = arith.constant dense<0.000000e+00> : vector<12x8xf32>
    %53 = tpu.matmul %49, %37, %cst_25 {dimension_numbers = #tpu.dot_dimension_numbers<[1], [0], [0], [1], [0, 0, 1, 1], [], []>} : vector<12x12xf32>, vector<12x8xf32>, vector<12x8xf32> -> vector<12x8xf32>
    %c0_26 = arith.constant 0 : index
    %c8 = arith.constant 8 : index
    %54 = vector.load %arg13[%c0_26, %c8] : memref<24x32xf32, #tpu.memory_space<vmem>>, vector<12x8xf32>
    tpu.vector_store %arg13[%c0_26, %c8], %53 {strides = array<i32>} : memref<24x32xf32, #tpu.memory_space<vmem>>, vector<12x8xf32>,
    %55 = vector.extract_strided_slice %14 {offsets = [0, 16], sizes = [12, 8], strides = [1, 1]} : vector<12x96xf32> to vector<12x8xf32>
    %56 = vector.extract_strided_slice %14 {offsets = [0, 48], sizes = [12, 8], strides = [1, 1]} : vector<12x96xf32> to vector<12x8xf32>
    %57 = vector.extract_strided_slice %14 {offsets = [0, 80], sizes = [12, 8], strides = [1, 1]} : vector<12x96xf32> to vector<12x8xf32>
    %cst_27 = arith.constant dense<0.000000e+00> : vector<12x12xf32>
    %58 = tpu.matmul %55, %56, %cst_27 {dimension_numbers = #tpu.dot_dimension_numbers<[1], [1], [0], [0], [0, 0, 1, 0], [], []>} : vector<12x8xf32>, vector<12x8xf32>, vector<12x12xf32> -> vector<12x12xf32>
    %59 = arith.addf %58, %1 : vector<12x12xf32>
    %cst_28 = arith.constant dense<0xFF800000> : vector<12xf32>
    %60 = vector.multi_reduction <maximumf>, %59, %cst_28 [1] : vector<12x12xf32> to vector<12xf32>
    %61 = vector.shape_cast %60 : vector<12xf32> to vector<12x1xf32>
    %62 = vector.broadcast %61 : vector<12x1xf32> to vector<12x12xf32>
    %63 = arith.subf %59, %62 : vector<12x12xf32>
    %64 = math.exp %63 : vector<12x12xf32>
    %cst_29 = arith.constant dense<0.000000e+00> : vector<12xf32>
    %65 = vector.multi_reduction <add>, %64, %cst_29 [1] : vector<12x12xf32> to vector<12xf32>
    %66 = vector.shape_cast %65 : vector<12xf32> to vector<12x1xf32>
    %67 = tpu.reciprocal %66 {approx = true} : vector<12x1xf32> -> vector<12x1xf32>
    %68 = vector.broadcast %67 : vector<12x1xf32> to vector<12x12xf32>
    %69 = arith.mulf %64, %68 : vector<12x12xf32>
    %c0_30 = arith.constant 0 : index
    %c2 = arith.constant 2 : index
    %c0_31 = arith.constant 0 : index
    %c0_32 = arith.constant 0 : index
    %70 = vector.load %arg11[%c0_30, %c2, %c0_31, %c0_32] : memref<2x4x12x12xf32, #tpu.memory_space<vmem>>, vector<1x1x12x12xf32>
    %71 = vector.shape_cast %70 : vector<1x1x12x12xf32> to vector<12x12xf32>
    %72 = vector.shape_cast %69 : vector<12x12xf32> to vector<1x1x12x12xf32>
    tpu.vector_store %arg11[%c0_30, %c2, %c0_31, %c0_32], %72 {strides = array<i32>} : memref<2x4x12x12xf32, #tpu.memory_space<vmem>>, vector<1x1x12x12xf32>,
    %cst_33 = arith.constant dense<0.000000e+00> : vector<12x8xf32>
    %73 = tpu.matmul %69, %57, %cst_33 {dimension_numbers = #tpu.dot_dimension_numbers<[1], [0], [0], [1], [0, 0, 1, 1], [], []>} : vector<12x12xf32>, vector<12x8xf32>, vector<12x8xf32> -> vector<12x8xf32>
    %c0_34 = arith.constant 0 : index
    %c16 = arith.constant 16 : index
    %74 = vector.load %arg13[%c0_34, %c16] : memref<24x32xf32, #tpu.memory_space<vmem>>, vector<12x8xf32>
    tpu.vector_store %arg13[%c0_34, %c16], %73 {strides = array<i32>} : memref<24x32xf32, #tpu.memory_space<vmem>>, vector<12x8xf32>,
    %75 = vector.extract_strided_slice %14 {offsets = [0, 24], sizes = [12, 8], strides = [1, 1]} : vector<12x96xf32> to vector<12x8xf32>
    %76 = vector.extract_strided_slice %14 {offsets = [0, 56], sizes = [12, 8], strides = [1, 1]} : vector<12x96xf32> to vector<12x8xf32>
    %77 = vector.extract_strided_slice %14 {offsets = [0, 88], sizes = [12, 8], strides = [1, 1]} : vector<12x96xf32> to vector<12x8xf32>
    %cst_35 = arith.constant dense<0.000000e+00> : vector<12x12xf32>
    %78 = tpu.matmul %75, %76, %cst_35 {dimension_numbers = #tpu.dot_dimension_numbers<[1], [1], [0], [0], [0, 0, 1, 0], [], []>} : vector<12x8xf32>, vector<12x8xf32>, vector<12x12xf32> -> vector<12x12xf32>
    %79 = arith.addf %78, %1 : vector<12x12xf32>
    %cst_36 = arith.constant dense<0xFF800000> : vector<12xf32>
    %80 = vector.multi_reduction <maximumf>, %79, %cst_36 [1] : vector<12x12xf32> to vector<12xf32>
    %81 = vector.shape_cast %80 : vector<12xf32> to vector<12x1xf32>
    %82 = vector.broadcast %81 : vector<12x1xf32> to vector<12x12xf32>
    %83 = arith.subf %79, %82 : vector<12x12xf32>
    %84 = math.exp %83 : vector<12x12xf32>
    %cst_37 = arith.constant dense<0.000000e+00> : vector<12xf32>
    %85 = vector.multi_reduction <add>, %84, %cst_37 [1] : vector<12x12xf32> to vector<12xf32>
    %86 = vector.shape_cast %85 : vector<12xf32> to vector<12x1xf32>
    %87 = tpu.reciprocal %86 {approx = true} : vector<12x1xf32> -> vector<12x1xf32>
    %88 = vector.broadcast %87 : vector<12x1xf32> to vector<12x12xf32>
    %89 = arith.mulf %84, %88 : vector<12x12xf32>
    %c0_38 = arith.constant 0 : index
    %c3 = arith.constant 3 : index
    %c0_39 = arith.constant 0 : index
    %c0_40 = arith.constant 0 : index
    %90 = vector.load %arg11[%c0_38, %c3, %c0_39, %c0_40] : memref<2x4x12x12xf32, #tpu.memory_space<vmem>>, vector<1x1x12x12xf32>
    %91 = vector.shape_cast %90 : vector<1x1x12x12xf32> to vector<12x12xf32>
    %92 = vector.shape_cast %89 : vector<12x12xf32> to vector<1x1x12x12xf32>
    tpu.vector_store %arg11[%c0_38, %c3, %c0_39, %c0_40], %92 {strides = array<i32>} : memref<2x4x12x12xf32, #tpu.memory_space<vmem>>, vector<1x1x12x12xf32>,
    %cst_41 = arith.constant dense<0.000000e+00> : vector<12x8xf32>
    %93 = tpu.matmul %89, %77, %cst_41 {dimension_numbers = #tpu.dot_dimension_numbers<[1], [0], [0], [1], [0, 0, 1, 1], [], []>} : vector<12x12xf32>, vector<12x8xf32>, vector<12x8xf32> -> vector<12x8xf32>
    %c0_42 = arith.constant 0 : index
    %c24 = arith.constant 24 : index
    %94 = vector.load %arg13[%c0_42, %c24] : memref<24x32xf32, #tpu.memory_space<vmem>>, vector<12x8xf32>
    tpu.vector_store %arg13[%c0_42, %c24], %93 {strides = array<i32>} : memref<24x32xf32, #tpu.memory_space<vmem>>, vector<12x8xf32>,
    %95 = vector.extract_strided_slice %13 {offsets = [12, 0], sizes = [12, 96], strides = [1, 1]} : vector<24x96xf32> to vector<12x96xf32>
    %96 = vector.extract_strided_slice %95 {offsets = [0, 0], sizes = [12, 8], strides = [1, 1]} : vector<12x96xf32> to vector<12x8xf32>
    %97 = vector.extract_strided_slice %95 {offsets = [0, 32], sizes = [12, 8], strides = [1, 1]} : vector<12x96xf32> to vector<12x8xf32>
    %98 = vector.extract_strided_slice %95 {offsets = [0, 64], sizes = [12, 8], strides = [1, 1]} : vector<12x96xf32> to vector<12x8xf32>
    %cst_43 = arith.constant dense<0.000000e+00> : vector<12x12xf32>
    %99 = tpu.matmul %96, %97, %cst_43 {dimension_numbers = #tpu.dot_dimension_numbers<[1], [1], [0], [0], [0, 0, 1, 0], [], []>} : vector<12x8xf32>, vector<12x8xf32>, vector<12x12xf32> -> vector<12x12xf32>
    %100 = arith.addf %99, %1 : vector<12x12xf32>
    %cst_44 = arith.constant dense<0xFF800000> : vector<12xf32>
    %101 = vector.multi_reduction <maximumf>, %100, %cst_44 [1] : vector<12x12xf32> to vector<12xf32>
    %102 = vector.shape_cast %101 : vector<12xf32> to vector<12x1xf32>
    %103 = vector.broadcast %102 : vector<12x1xf32> to vector<12x12xf32>
    %104 = arith.subf %100, %103 : vector<12x12xf32>
    %105 = math.exp %104 : vector<12x12xf32>
    %cst_45 = arith.constant dense<0.000000e+00> : vector<12xf32>
    %106 = vector.multi_reduction <add>, %105, %cst_45 [1] : vector<12x12xf32> to vector<12xf32>
    %107 = vector.shape_cast %106 : vector<12xf32> to vector<12x1xf32>
    %108 = tpu.reciprocal %107 {approx = true} : vector<12x1xf32> -> vector<12x1xf32>
    %109 = vector.broadcast %108 : vector<12x1xf32> to vector<12x12xf32>
    %110 = arith.mulf %105, %109 : vector<12x12xf32>
    %c1_46 = arith.constant 1 : index
    %c0_47 = arith.constant 0 : index
    %c0_48 = arith.constant 0 : index
    %c0_49 = arith.constant 0 : index
    %111 = vector.load %arg11[%c1_46, %c0_47, %c0_48, %c0_49] : memref<2x4x12x12xf32, #tpu.memory_space<vmem>>, vector<1x1x12x12xf32>
    %112 = vector.shape_cast %111 : vector<1x1x12x12xf32> to vector<12x12xf32>
    %113 = vector.shape_cast %110 : vector<12x12xf32> to vector<1x1x12x12xf32>
    tpu.vector_store %arg11[%c1_46, %c0_47, %c0_48, %c0_49], %113 {strides = array<i32>} : memref<2x4x12x12xf32, #tpu.memory_space<vmem>>, vector<1x1x12x12xf32>,
    %cst_50 = arith.constant dense<0.000000e+00> : vector<12x8xf32>
    %114 = tpu.matmul %110, %98, %cst_50 {dimension_numbers = #tpu.dot_dimension_numbers<[1], [0], [0], [1], [0, 0, 1, 1], [], []>} : vector<12x12xf32>, vector<12x8xf32>, vector<12x8xf32> -> vector<12x8xf32>
    %c12 = arith.constant 12 : index
    %c0_51 = arith.constant 0 : index
    %115 = vector.load %arg13[%c12, %c0_51] : memref<24x32xf32, #tpu.memory_space<vmem>>, vector<12x8xf32>
    tpu.vector_store %arg13[%c12, %c0_51], %114 {strides = array<i32>} : memref<24x32xf32, #tpu.memory_space<vmem>>, vector<12x8xf32>,
    %116 = vector.extract_strided_slice %95 {offsets = [0, 8], sizes = [12, 8], strides = [1, 1]} : vector<12x96xf32> to vector<12x8xf32>
    %117 = vector.extract_strided_slice %95 {offsets = [0, 40], sizes = [12, 8], strides = [1, 1]} : vector<12x96xf32> to vector<12x8xf32>
    %118 = vector.extract_strided_slice %95 {offsets = [0, 72], sizes = [12, 8], strides = [1, 1]} : vector<12x96xf32> to vector<12x8xf32>
    %cst_52 = arith.constant dense<0.000000e+00> : vector<12x12xf32>
    %119 = tpu.matmul %116, %117, %cst_52 {dimension_numbers = #tpu.dot_dimension_numbers<[1], [1], [0], [0], [0, 0, 1, 0], [], []>} : vector<12x8xf32>, vector<12x8xf32>, vector<12x12xf32> -> vector<12x12xf32>
    %120 = arith.addf %119, %1 : vector<12x12xf32>
    %cst_53 = arith.constant dense<0xFF800000> : vector<12xf32>
    %121 = vector.multi_reduction <maximumf>, %120, %cst_53 [1] : vector<12x12xf32> to vector<12xf32>
    %122 = vector.shape_cast %121 : vector<12xf32> to vector<12x1xf32>
    %123 = vector.broadcast %122 : vector<12x1xf32> to vector<12x12xf32>
    %124 = arith.subf %120, %123 : vector<12x12xf32>
    %125 = math.exp %124 : vector<12x12xf32>
    %cst_54 = arith.constant dense<0.000000e+00> : vector<12xf32>
    %126 = vector.multi_reduction <add>, %125, %cst_54 [1] : vector<12x12xf32> to vector<12xf32>
    %127 = vector.shape_cast %126 : vector<12xf32> to vector<12x1xf32>
    %128 = tpu.reciprocal %127 {approx = true} : vector<12x1xf32> -> vector<12x1xf32>
    %129 = vector.broadcast %128 : vector<12x1xf32> to vector<12x12xf32>
    %130 = arith.mulf %125, %129 : vector<12x12xf32>
    %c1_55 = arith.constant 1 : index
    %c1_56 = arith.constant 1 : index
    %c0_57 = arith.constant 0 : index
    %c0_58 = arith.constant 0 : index
    %131 = vector.load %arg11[%c1_55, %c1_56, %c0_57, %c0_58] : memref<2x4x12x12xf32, #tpu.memory_space<vmem>>, vector<1x1x12x12xf32>
    %132 = vector.shape_cast %131 : vector<1x1x12x12xf32> to vector<12x12xf32>
    %133 = vector.shape_cast %130 : vector<12x12xf32> to vector<1x1x12x12xf32>
    tpu.vector_store %arg11[%c1_55, %c1_56, %c0_57, %c0_58], %133 {strides = array<i32>} : memref<2x4x12x12xf32, #tpu.memory_space<vmem>>, vector<1x1x12x12xf32>,
    %cst_59 = arith.constant dense<0.000000e+00> : vector<12x8xf32>
    %134 = tpu.matmul %130, %118, %cst_59 {dimension_numbers = #tpu.dot_dimension_numbers<[1], [0], [0], [1], [0, 0, 1, 1], [], []>} : vector<12x12xf32>, vector<12x8xf32>, vector<12x8xf32> -> vector<12x8xf32>
    %c12_60 = arith.constant 12 : index
    %c8_61 = arith.constant 8 : index
    %135 = vector.load %arg13[%c12_60, %c8_61] : memref<24x32xf32, #tpu.memory_space<vmem>>, vector<12x8xf32>
    tpu.vector_store %arg13[%c12_60, %c8_61], %134 {strides = array<i32>} : memref<24x32xf32, #tpu.memory_space<vmem>>, vector<12x8xf32>,
    %136 = vector.extract_strided_slice %95 {offsets = [0, 16], sizes = [12, 8], strides = [1, 1]} : vector<12x96xf32> to vector<12x8xf32>
    %137 = vector.extract_strided_slice %95 {offsets = [0, 48], sizes = [12, 8], strides = [1, 1]} : vector<12x96xf32> to vector<12x8xf32>
    %138 = vector.extract_strided_slice %95 {offsets = [0, 80], sizes = [12, 8], strides = [1, 1]} : vector<12x96xf32> to vector<12x8xf32>
    %cst_62 = arith.constant dense<0.000000e+00> : vector<12x12xf32>
    %139 = tpu.matmul %136, %137, %cst_62 {dimension_numbers = #tpu.dot_dimension_numbers<[1], [1], [0], [0], [0, 0, 1, 0], [], []>} : vector<12x8xf32>, vector<12x8xf32>, vector<12x12xf32> -> vector<12x12xf32>
    %140 = arith.addf %139, %1 : vector<12x12xf32>
    %cst_63 = arith.constant dense<0xFF800000> : vector<12xf32>
    %141 = vector.multi_reduction <maximumf>, %140, %cst_63 [1] : vector<12x12xf32> to vector<12xf32>
    %142 = vector.shape_cast %141 : vector<12xf32> to vector<12x1xf32>
    %143 = vector.broadcast %142 : vector<12x1xf32> to vector<12x12xf32>
    %144 = arith.subf %140, %143 : vector<12x12xf32>
    %145 = math.exp %144 : vector<12x12xf32>
    %cst_64 = arith.constant dense<0.000000e+00> : vector<12xf32>
    %146 = vector.multi_reduction <add>, %145, %cst_64 [1] : vector<12x12xf32> to vector<12xf32>
    %147 = vector.shape_cast %146 : vector<12xf32> to vector<12x1xf32>
    %148 = tpu.reciprocal %147 {approx = true} : vector<12x1xf32> -> vector<12x1xf32>
    %149 = vector.broadcast %148 : vector<12x1xf32> to vector<12x12xf32>
    %150 = arith.mulf %145, %149 : vector<12x12xf32>
    %c1_65 = arith.constant 1 : index
    %c2_66 = arith.constant 2 : index
    %c0_67 = arith.constant 0 : index
    %c0_68 = arith.constant 0 : index
    %151 = vector.load %arg11[%c1_65, %c2_66, %c0_67, %c0_68] : memref<2x4x12x12xf32, #tpu.memory_space<vmem>>, vector<1x1x12x12xf32>
    %152 = vector.shape_cast %151 : vector<1x1x12x12xf32> to vector<12x12xf32>
    %153 = vector.shape_cast %150 : vector<12x12xf32> to vector<1x1x12x12xf32>
    tpu.vector_store %arg11[%c1_65, %c2_66, %c0_67, %c0_68], %153 {strides = array<i32>} : memref<2x4x12x12xf32, #tpu.memory_space<vmem>>, vector<1x1x12x12xf32>,
    %cst_69 = arith.constant dense<0.000000e+00> : vector<12x8xf32>
    %154 = tpu.matmul %150, %138, %cst_69 {dimension_numbers = #tpu.dot_dimension_numbers<[1], [0], [0], [1], [0, 0, 1, 1], [], []>} : vector<12x12xf32>, vector<12x8xf32>, vector<12x8xf32> -> vector<12x8xf32>
    %c12_70 = arith.constant 12 : index
    %c16_71 = arith.constant 16 : index
    %155 = vector.load %arg13[%c12_70, %c16_71] : memref<24x32xf32, #tpu.memory_space<vmem>>, vector<12x8xf32>
    tpu.vector_store %arg13[%c12_70, %c16_71], %154 {strides = array<i32>} : memref<24x32xf32, #tpu.memory_space<vmem>>, vector<12x8xf32>,
    %156 = vector.extract_strided_slice %95 {offsets = [0, 24], sizes = [12, 8], strides = [1, 1]} : vector<12x96xf32> to vector<12x8xf32>
    %157 = vector.extract_strided_slice %95 {offsets = [0, 56], sizes = [12, 8], strides = [1, 1]} : vector<12x96xf32> to vector<12x8xf32>
    %158 = vector.extract_strided_slice %95 {offsets = [0, 88], sizes = [12, 8], strides = [1, 1]} : vector<12x96xf32> to vector<12x8xf32>
    %cst_72 = arith.constant dense<0.000000e+00> : vector<12x12xf32>
    %159 = tpu.matmul %156, %157, %cst_72 {dimension_numbers = #tpu.dot_dimension_numbers<[1], [1], [0], [0], [0, 0, 1, 0], [], []>} : vector<12x8xf32>, vector<12x8xf32>, vector<12x12xf32> -> vector<12x12xf32>
    %160 = arith.addf %159, %1 : vector<12x12xf32>
    %cst_73 = arith.constant dense<0xFF800000> : vector<12xf32>
    %161 = vector.multi_reduction <maximumf>, %160, %cst_73 [1] : vector<12x12xf32> to vector<12xf32>
    %162 = vector.shape_cast %161 : vector<12xf32> to vector<12x1xf32>
    %163 = vector.broadcast %162 : vector<12x1xf32> to vector<12x12xf32>
    %164 = arith.subf %160, %163 : vector<12x12xf32>
    %165 = math.exp %164 : vector<12x12xf32>
    %cst_74 = arith.constant dense<0.000000e+00> : vector<12xf32>
    %166 = vector.multi_reduction <add>, %165, %cst_74 [1] : vector<12x12xf32> to vector<12xf32>
    %167 = vector.shape_cast %166 : vector<12xf32> to vector<12x1xf32>
    %168 = tpu.reciprocal %167 {approx = true} : vector<12x1xf32> -> vector<12x1xf32>
    %169 = vector.broadcast %168 : vector<12x1xf32> to vector<12x12xf32>
    %170 = arith.mulf %165, %169 : vector<12x12xf32>
    %c1_75 = arith.constant 1 : index
    %c3_76 = arith.constant 3 : index
    %c0_77 = arith.constant 0 : index
    %c0_78 = arith.constant 0 : index
    %171 = vector.load %arg11[%c1_75, %c3_76, %c0_77, %c0_78] : memref<2x4x12x12xf32, #tpu.memory_space<vmem>>, vector<1x1x12x12xf32>
    %172 = vector.shape_cast %171 : vector<1x1x12x12xf32> to vector<12x12xf32>
    %173 = vector.shape_cast %170 : vector<12x12xf32> to vector<1x1x12x12xf32>
    tpu.vector_store %arg11[%c1_75, %c3_76, %c0_77, %c0_78], %173 {strides = array<i32>} : memref<2x4x12x12xf32, #tpu.memory_space<vmem>>, vector<1x1x12x12xf32>,
    %cst_79 = arith.constant dense<0.000000e+00> : vector<12x8xf32>
    %174 = tpu.matmul %170, %158, %cst_79 {dimension_numbers = #tpu.dot_dimension_numbers<[1], [0], [0], [1], [0, 0, 1, 1], [], []>} : vector<12x12xf32>, vector<12x8xf32>, vector<12x8xf32> -> vector<12x8xf32>
    %c12_80 = arith.constant 12 : index
    %c24_81 = arith.constant 24 : index
    %175 = vector.load %arg13[%c12_80, %c24_81] : memref<24x32xf32, #tpu.memory_space<vmem>>, vector<12x8xf32>
    tpu.vector_store %arg13[%c12_80, %c24_81], %174 {strides = array<i32>} : memref<24x32xf32, #tpu.memory_space<vmem>>, vector<12x8xf32>,
    %c0_82 = arith.constant 0 : index
    %c0_83 = arith.constant 0 : index
    %176 = vector.load %arg13[%c0_82, %c0_83] : memref<24x32xf32, #tpu.memory_space<vmem>>, vector<24x32xf32>
    %c0_84 = arith.constant 0 : index
    %c0_85 = arith.constant 0 : index
    %177 = vector.load %arg5[%c0_84, %c0_85] : memref<32x32xf32, #tpu.memory_space<vmem>>, vector<32x32xf32>
    %cst_86 = arith.constant dense<0.000000e+00> : vector<24x32xf32>
    %178 = tpu.matmul %176, %177, %cst_86 {dimension_numbers = #tpu.dot_dimension_numbers<[1], [0], [0], [1], [0, 0, 1, 1], [], []>} : vector<24x32xf32>, vector<32x32xf32>, vector<24x32xf32> -> vector<24x32xf32>
    %179 = vector.broadcast %3 : vector<1x32xf32> to vector<24x32xf32>
    %180 = arith.addf %178, %179 : vector<24x32xf32>
    %181 = arith.addf %0, %180 : vector<24x32xf32>
    %cst_87 = arith.constant dense<0.000000e+00> : vector<24xf32>
    %182 = vector.multi_reduction <add>, %181, %cst_87 [1] : vector<24x32xf32> to vector<24xf32>
    %183 = vector.shape_cast %182 : vector<24xf32> to vector<24x1xf32>
    %cst_88 = arith.constant 3.200000e+01 : f32
    %184 = vector.broadcast %cst_88 : f32 to vector<24x1xf32>
    %185 = arith.divf %183, %184 : vector<24x1xf32>
    %186 = vector.broadcast %185 : vector<24x1xf32> to vector<24x32xf32>
    %187 = arith.subf %181, %186 : vector<24x32xf32>
    %188 = arith.mulf %187, %187 : vector<24x32xf32>
    %cst_89 = arith.constant dense<0.000000e+00> : vector<24xf32>
    %189 = vector.multi_reduction <add>, %188, %cst_89 [1] : vector<24x32xf32> to vector<24xf32>
    %190 = vector.shape_cast %189 : vector<24xf32> to vector<24x1xf32>
    %cst_90 = arith.constant 3.200000e+01 : f32
    %191 = vector.broadcast %cst_90 : f32 to vector<24x1xf32>
    %192 = arith.divf %190, %191 : vector<24x1xf32>
    %193 = vector.broadcast %185 : vector<24x1xf32> to vector<24x32xf32>
    %194 = arith.subf %181, %193 : vector<24x32xf32>
    %cst_91 = arith.constant 9.99999974E-6 : f32
    %195 = vector.broadcast %cst_91 : f32 to vector<24x1xf32>
    %196 = arith.addf %192, %195 : vector<24x1xf32>
    %197 = math.rsqrt %196 : vector<24x1xf32>
    %198 = vector.broadcast %197 : vector<24x1xf32> to vector<24x32xf32>
    %199 = arith.mulf %194, %198 : vector<24x32xf32>
    %200 = vector.broadcast %4 : vector<1x32xf32> to vector<24x32xf32>
    %201 = arith.mulf %199, %200 : vector<24x32xf32>
    %202 = vector.broadcast %5 : vector<1x32xf32> to vector<24x32xf32>
    %203 = arith.addf %201, %202 : vector<24x32xf32>
    %c0_92 = arith.constant 0 : index
    %c0_93 = arith.constant 0 : index
    %204 = vector.load %arg6[%c0_92, %c0_93] : memref<32x128xf32, #tpu.memory_space<vmem>>, vector<32x128xf32>
    %cst_94 = arith.constant dense<0.000000e+00> : vector<24x128xf32>
    %205 = tpu.matmul %203, %204, %cst_94 {dimension_numbers = #tpu.dot_dimension_numbers<[1], [0], [0], [1], [0, 0, 1, 1], [], []>} : vector<24x32xf32>, vector<32x128xf32>, vector<24x128xf32> -> vector<24x128xf32>
    %c0_95 = arith.constant 0 : index
    %c0_96 = arith.constant 0 : index
    %206 = vector.load %arg7[%c0_95, %c0_96] : memref<1x128xf32, #tpu.memory_space<vmem>>, vector<1x128xf32>
    %207 = vector.broadcast %206 : vector<1x128xf32> to vector<24x128xf32>
    %208 = arith.addf %205, %207 : vector<24x128xf32>
    %cst_97 = arith.constant 5.000000e-01 : f32
    %209 = vector.broadcast %cst_97 : f32 to vector<24x128xf32>
    %210 = arith.mulf %209, %208 : vector<24x128xf32>
    %cst_98 = arith.constant 0.707106769 : f32
    %211 = vector.broadcast %cst_98 : f32 to vector<24x128xf32>
    %212 = arith.mulf %208, %211 : vector<24x128xf32>
    %213 = math.erf %212 : vector<24x128xf32>
    %cst_99 = arith.constant 1.000000e+00 : f32
    %214 = vector.broadcast %cst_99 : f32 to vector<24x128xf32>
    %215 = arith.addf %214, %213 : vector<24x128xf32>
    %216 = arith.mulf %210, %215 : vector<24x128xf32>
    %c0_100 = arith.constant 0 : index
    %c0_101 = arith.constant 0 : index
    %217 = vector.load %arg12[%c0_100, %c0_101] : memref<24x128xf32, #tpu.memory_space<vmem>>, vector<24x128xf32>
    tpu.vector_store %arg12[%c0_100, %c0_101], %216 {strides = array<i32>} : memref<24x128xf32, #tpu.memory_space<vmem>>, vector<24x128xf32>,
    %c0_102 = arith.constant 0 : index
    %c0_103 = arith.constant 0 : index
    %218 = vector.load %arg8[%c0_102, %c0_103] : memref<128x32xf32, #tpu.memory_space<vmem>>, vector<128x32xf32>
    %cst_104 = arith.constant dense<0.000000e+00> : vector<24x32xf32>
    %219 = tpu.matmul %216, %218, %cst_104 {dimension_numbers = #tpu.dot_dimension_numbers<[1], [0], [0], [1], [0, 0, 1, 1], [], []>} : vector<24x128xf32>, vector<128x32xf32>, vector<24x32xf32> -> vector<24x32xf32>
    %220 = vector.broadcast %6 : vector<1x32xf32> to vector<24x32xf32>
    %221 = arith.addf %219, %220 : vector<24x32xf32>
    %222 = arith.addf %203, %221 : vector<24x32xf32>
    %cst_105 = arith.constant dense<0.000000e+00> : vector<24xf32>
    %223 = vector.multi_reduction <add>, %222, %cst_105 [1] : vector<24x32xf32> to vector<24xf32>
    %224 = vector.shape_cast %223 : vector<24xf32> to vector<24x1xf32>
    %cst_106 = arith.constant 3.200000e+01 : f32
    %225 = vector.broadcast %cst_106 : f32 to vector<24x1xf32>
    %226 = arith.divf %224, %225 : vector<24x1xf32>
    %227 = vector.broadcast %226 : vector<24x1xf32> to vector<24x32xf32>
    %228 = arith.subf %222, %227 : vector<24x32xf32>
    %229 = arith.mulf %228, %228 : vector<24x32xf32>
    %cst_107 = arith.constant dense<0.000000e+00> : vector<24xf32>
    %230 = vector.multi_reduction <add>, %229, %cst_107 [1] : vector<24x32xf32> to vector<24xf32>
    %231 = vector.shape_cast %230 : vector<24xf32> to vector<24x1xf32>
    %cst_108 = arith.constant 3.200000e+01 : f32
    %232 = vector.broadcast %cst_108 : f32 to vector<24x1xf32>
    %233 = arith.divf %231, %232 : vector<24x1xf32>
    %234 = vector.broadcast %226 : vector<24x1xf32> to vector<24x32xf32>
    %235 = arith.subf %222, %234 : vector<24x32xf32>
    %cst_109 = arith.constant 9.99999974E-6 : f32
    %236 = vector.broadcast %cst_109 : f32 to vector<24x1xf32>
    %237 = arith.addf %233, %236 : vector<24x1xf32>
    %238 = math.rsqrt %237 : vector<24x1xf32>
    %239 = vector.broadcast %238 : vector<24x1xf32> to vector<24x32xf32>
    %240 = arith.mulf %235, %239 : vector<24x32xf32>
    %241 = vector.broadcast %7 : vector<1x32xf32> to vector<24x32xf32>
    %242 = arith.mulf %240, %241 : vector<24x32xf32>
    %243 = vector.broadcast %8 : vector<1x32xf32> to vector<24x32xf32>
    %244 = arith.addf %242, %243 : vector<24x32xf32>
    %c0_110 = arith.constant 0 : index
    %c0_111 = arith.constant 0 : index
    %245 = vector.load %arg10[%c0_110, %c0_111] : memref<24x32xf32, #tpu.memory_space<vmem>>, vector<24x32xf32>
    tpu.vector_store %arg10[%c0_110, %c0_111], %244 {strides = array<i32>} : memref<24x32xf32, #tpu.memory_space<vmem>>, vector<24x32xf32>,
    return
  }
  func.func @transform_0(%arg0: i32) -> (i32, i32) {
    %c0_i32 = arith.constant 0 : i32
    %c0_i32_0 = arith.constant 0 : i32
    %c0_i32_1 = arith.constant 0 : i32
    return %c0_i32, %c0_i32_0 : i32, i32
  }
  func.func @transform_1(%arg0: i32) -> (i32, i32) {
    %c0_i32 = arith.constant 0 : i32
    %c0_i32_0 = arith.constant 0 : i32
    %c0_i32_1 = arith.constant 0 : i32
    return %c0_i32, %c0_i32_0 : i32, i32
  }
  func.func @transform_2(%arg0: i32) -> (i32, i32) {
    %c0_i32 = arith.constant 0 : i32
    %c0_i32_0 = arith.constant 0 : i32
    %c0_i32_1 = arith.constant 0 : i32
    return %c0_i32, %c0_i32_0 : i32, i32
  }
  func.func @transform_3(%arg0: i32) -> (i32, i32) {
    %c0_i32 = arith.constant 0 : i32
    %c0_i32_0 = arith.constant 0 : i32
    %c0_i32_1 = arith.constant 0 : i32
    return %c0_i32, %c0_i32_0 : i32, i32
  }
  func.func @transform_4(%arg0: i32) -> (i32, i32) {
    %c0_i32 = arith.constant 0 : i32
    %c0_i32_0 = arith.constant 0 : i32
    %c0_i32_1 = arith.constant 0 : i32
    return %c0_i32, %c0_i32_0 : i32, i32
  }
  func.func @transform_5(%arg0: i32) -> (i32, i32) {
    %c0_i32 = arith.constant 0 : i32
    %c0_i32_0 = arith.constant 0 : i32
    %c0_i32_1 = arith.constant 0 : i32
    return %c0_i32, %c0_i32_0 : i32, i32
  }
  func.func @transform_6(%arg0: i32) -> (i32, i32) {
    %c0_i32 = arith.constant 0 : i32
    %c0_i32_0 = arith.constant 0 : i32
    %c0_i32_1 = arith.constant 0 : i32
    return %c0_i32, %c0_i32_0 : i32, i32
  }
  func.func @transform_7(%arg0: i32) -> (i32, i32) {
    %c0_i32 = arith.constant 0 : i32
    %c0_i32_0 = arith.constant 0 : i32
    %c0_i32_1 = arith.constant 0 : i32
    return %c0_i32, %c0_i32_0 : i32, i32
  }
  func.func @transform_8(%arg0: i32) -> (i32, i32) {
    %c0_i32 = arith.constant 0 : i32
    %c0_i32_0 = arith.constant 0 : i32
    %c0_i32_1 = arith.constant 0 : i32
    return %c0_i32, %c0_i32_0 : i32, i32
  }
  func.func @transform_9(%arg0: i32) -> (i32, i32) {
    %c0_i32 = arith.constant 0 : i32
    %c0_i32_0 = arith.constant 0 : i32
    %c0_i32_1 = arith.constant 0 : i32
    return %c0_i32, %c0_i32_0 : i32, i32
  }
  func.func @transform_10(%arg0: i32) -> (i32, i32, i32, i32) {
    %c0_i32 = arith.constant 0 : i32
    %c0_i32_0 = arith.constant 0 : i32
    %c0_i32_1 = arith.constant 0 : i32
    %c0_i32_2 = arith.constant 0 : i32
    %c0_i32_3 = arith.constant 0 : i32
    return %c0_i32, %c0_i32_0, %c0_i32_1, %c0_i32_2 : i32, i32, i32, i32
  }
  func.func @transform_11(%arg0: i32) -> (i32, i32) {
    %c0_i32 = arith.constant 0 : i32
    %c0_i32_0 = arith.constant 0 : i32
    %c0_i32_1 = arith.constant 0 : i32
    return %c0_i32, %c0_i32_0 : i32, i32
  }
}

</mosaic_0001>

<bundles_post_ra>
// kernel: tpu_custom_call.1
= control target key start
LH: loop header
LB: loop body
LE: loop exit
PB: predicated region body
PF: predicated region fallthrough
CT: control target
= control target key end

     0   :  { %17 = vsyncpa [#allocation4], 0  ;;  %v3079_v3 = vmov 0.0|0.0   ;;  %vm3080_vm0 = vmmov 0   ;;  %v3081_v6 = vmov 0.0   ;;  %s3764_s0 = inlined_call_operand.vmem [shape: f32[12,12], index: 0, kind: input, shape index: {}]   ;;  %s3765_s1 = inlined_call_operand.vmem [shape: f32[24,32], index: 1, kind: input, shape index: {}]   ;;  %s3766_s2 = inlined_call_operand.vmem [shape: f32[32,96], index: 2, kind: input, shape index: {}]   ;;  %s3767_s3 = inlined_call_operand.vmem [shape: f32[1,96], index: 3, kind: input, shape index: {}]   ;;  %s3768_s4 = inlined_call_operand.vmem [shape: f32[32,32], index: 4, kind: input, shape index: {}]   ;;  %s3769_s5 = inlined_call_operand.vmem [shape: f32[32,128], index: 5, kind: input, shape index: {}]   ;;  %s3770_s6 = inlined_call_operand.vmem [shape: f32[1,128], index: 6, kind: input, shape index: {}]   ;;  %s3771_s7 = inlined_call_operand.vmem [shape: f32[128,32], index: 7, kind: input, shape index: {}]   ;;  %s3772_s8 = inlined_call_operand.vmem [shape: f32[6,32], index: 8, kind: input, shape index: {}]   ;;  %s3773_s9 = inlined_call_operand.hbm [shape: f32[24,32], index: 9, kind: output, shape index: {0}]   ;;  %s3774_s10 = inlined_call_operand.vmem [shape: f32[2,4,12,12], index: 10, kind: output, shape index: {1}]   ;;  %s3775_s11 = inlined_call_operand.hbm [shape: f32[24,128], index: 11, kind: output, shape index: {2}]  }
   0x1   :  { %v43_v0 = vld [vmem:[%s3766_s2] sm:$0xff]  ;;  %v44_v1 = vld [vmem:[%s3766_s2 + $0x8] sm:$0xff]  ;;  %v45_v2 = vld [vmem:[%s3766_s2 + $0x10] sm:$0xff]  ;;  %2707 = vmatprep.subr.bf16.mxu0 %v3079_v3  ;;  %2511 = vmatprep.mubr.msk.f32.mxu0 %vm3080_vm0, %v3081_v6 }
   0x2   :  { %v2708_v4 = vpack.c.bf16 %v44_v1, %v43_v0  ;;  %v46_v5 = vld [vmem:[%s3766_s2 + $0x18] sm:$0xff] }
   0x3   :  { %18 = vsyncpa [#allocation6], 0  ;;  %v2711_v7 = vpack.c.bf16 %v46_v5, %v45_v2  ;;  %v37_v8 = vld [vmem:[%s3765_s1] sm:$0xff]  ;;  %vm54_vm1 = vcmask 261120   ;;  %v38_v9 = vld [vmem:[%s3765_s1 + $0x8] sm:$0xff]  ;;  %vm150_vm2 = vcmask 64512  }
   0x4   :  { %2709 = vmatpush3.bf16.msra.mxu0 %v2708_v4  ;;  %v39_v10 = vld [vmem:[%s3765_s1 + $0x10] sm:$0xff]  ;;  %v2318_v11 = vld [vmem:[%s3767_s3] ss:$0 sm:$0xff]  ;;  %s3082_s3 = smov 96   ;;  %vm3211_vm3 = vmpackc.low %vm150_vm2, %vm150_vm2  ;;  %vm238_vm4 = vcmask 93184   ;;  %vm234_vm5 = vcmask 97280  }
   0x5   :  { %2710 = vmatprep.subr.bf16.mxu0 %v3079_v3  ;;  %v3224_v27 = vld [vmem:[%s3764_s0 + $0x8] sm:$0xf]  ;;  %v3229_v28 = vld [vmem:[%s3764_s0] sm:$0xff]  ;;  %s3083_s17 = smov 64   ;;  %s3084_s0 = smov 88   ;;  %vm271_vm6 = vcmask 1043456  }
   0x6   :  { %s3085_s18 = smov 120   ;;  %vm3086_vm7 = vmmov 1   ;;  %vm350_vm9 = vcmask 60416   ;;  %s3087_s23 = smov 56   ;;  %vm564_vm10 = vcmask 130112   ;;  %vm780_vm11 = vcmask 195712  }
   0x7   :  { %vm3242_vm8 = vmpackc.low %vm271_vm6, %vm3086_vm7  ;;  %s3088_s24 = smov 80   ;;  %s3089_s25 = smov 112   ;;  %vm996_vm12 = vcmask 261312   ;;  %vm566_vm13 = vcmask 126016   ;;  %vm782_vm14 = vcmask 191616   ;;  %v1853_v44 = vld [vmem:[%s3768_s4 + $0x10] sm:$0xff] }
   0x8   :  { %2712 = vmatpush3.bf16.msra.mxu0 %v2711_v7  ;;  %s3090_s29 = smov 72   ;;  %s3091_s30 = smov 104   ;;  %vm998_vm15 = vcmask 257216  }
   0x9   :  { %s3092_s12 = smov 48   ;;  %s3093_s19 = smov 40  }
   0xa   :  { %s3095_s13 = smov 16   ;;  %s3096_s14 = smov 24  }
   0xb   :  { %2512 = vmatmul.mubr.msk.f32.vlgmr.msra.gmra.mrb[0].mxu0 %vm54_vm1, %v37_v8 }
   0xc   :  { %2514 = vmatprep.mubr.msk.f32.mxu0 %vm3080_vm0, %v3081_v6 }
   0xf   :  { %2515 = vmatmul.mubr.msk.f32.gmra.mrb[2].mxu0 %vm54_vm1, %v38_v9 }
  0x10   :  { %2517 = vmatprep.mubr.msk.f32.mxu0 %vm3080_vm0, %v3081_v6 }
  0x13   :  { %2518 = vmatmul.mubr.msk.f32.gmra.mrb[4].mxu0 %vm54_vm1, %v39_v10 }
  0xde   :  { %v130_v12 = vpop.f32.mrb[0].mxu0 }
  0xdf   :  { %v3195_v13 = vadd.f32 %v2318_v11, %v130_v12  ;;  %v2513_v14 = vpop.f32.mrb[1].mxu0 }
  0xe1   :  { %2524 = vmatprep.mubr.msk.f32.mxu0 %vm150_vm2, %v3195_v13 }
  0xe2   :  { %v135_v15 = vpop.f32.mrb[2].mxu0 }
  0xe3   :  { %v3199_v16 = vadd.f32 %v2318_v11, %v135_v15  ;;  %v2516_v17 = vpop.f32.mrb[3].mxu0 }
  0xe5   :  { %v3203_v18 = vpack.i.bf16 %v3199_v16, %v3195_v13 }
  0xe6   :  { %v140_v19 = vpop.f32.mrb[4].mxu0 }
  0xe7   :  { %v3205_v20 = vadd.f32 %v2318_v11, %v140_v19  ;;  %2867 = vrot.lane.b32.xlu0 %v3203_v18, %s3082_s3  ;;  %v2519_v21 = vpop.f32.mrb[5].mxu0 }
 0x159   :  { %v2868_v22 = vpop.permute.xlu0 %2867 }
 0x15a   :  { %v2870_v23 = vunpack.i.h.bf16 %v2868_v22  ;;  %v2869_v24 = vunpack.i.l.bf16 %v2868_v22 }
 0x15c   :  { %v2713_v26 = vpack.c.bf16 %v2870_v23, %v2869_v24 }
 0x15e   :  { %2715 = vmatprep.subr.msk.bf16.mxu0 %vm3211_vm3, %v2713_v26 }
 0x15f   :  { %2718 = vmatpush3.bf16.xpose.msk.msra.mxu0 %vm3211_vm3, %v2713_v26 }
 0x166   :  { %2525 = vmatmul.mubr.msk.f32.vlgmr.msra.gmra.mrb[6].mxu0 %vm150_vm2, %v3199_v16 }
 0x239   :  { %v2526_v29 = vpop.f32.mrb[6].mxu0 }
 0x23a   :  { %v231_v30 = vadd.f32 %v2526_v29, %v3224_v27  ;;  %v225_v31 = vpop.f32.mrb[7].mxu0 }
 0x23b   :  { %v226_v32 = vadd.f32 %v225_v31, %v3229_v28 }
 0x23c   :  { %v239_v33 = vsel %vm238_vm4, %v231_v30, -inf }
 0x23d   :  { %240 = vmax.xlane.f32.xlu1 %v239_v33  ;;  %v235_v34 = vsel %vm234_vm5, %v226_v32, -inf }
 0x23e   :  { %236 = vmax.xlane.f32.xlu0 %v235_v34 }
 0x24e   :  { %2872 = vrot.lane.b32.xlu1 %v3203_v18, %s3083_s17 }
 0x252   :  { %2877 = vrot.lane.b32.xlu1 %v3203_v18, %s3084_s0 }
 0x254   :  { %354 = vrot.lane.b32.xlu0 %v3199_v16, %s3085_s18 }
 0x2ca   :  { %v241_v35 = vpop.xlane.xlu1 %240 }
 0x2cb   :  { %v243_v36 = vsub.f32 %v231_v30, %v241_v35  ;;  %v237_v37 = vpop.xlane.xlu0 %236 }
 0x2cc   :  { %v242_v38 = vsub.f32 %v226_v32, %v237_v37 }
 0x2cd   :  { %v246_v39 = vmul.f32 1.442695, %v243_v36 }
 0x2ce   :  { %v244_v40 = vmul.f32 1.442695, %v242_v38  ;;  %v2873_v41 = vpop.permute.xlu1 %2872 }
 0x2cf   :  { %2946 = vpow2.f32 %v246_v39  ;;  %v2875_v42 = vunpack.i.h.bf16 %v2873_v41  ;;  %v2874_v43 = vunpack.i.l.bf16 %v2873_v41  ;;  %v355_v61 = vpop.permute.xlu0 %354 }
 0x2d0   :  { %2948 = vpow2.f32 %v244_v40 }
 0x2d1   :  { %v2719_v45 = vpack.c.bf16 %v2875_v42, %v2874_v43 }
 0x2d2   :  { %v2878_v46 = vpop.permute.xlu1 %2877 }
 0x2d3   :  { %v2880_v47 = vunpack.i.h.bf16 %v2878_v46  ;;  %v2879_v48 = vunpack.i.l.bf16 %v2878_v46  ;;  %2721 = vmatprep.subr.msk.bf16.mxu0 %vm3242_vm8, %v2719_v45 }
 0x2d4   :  { %2724 = vmatpush3.bf16.msk.msra.mxu0 %vm3242_vm8, %v2719_v45 }
 0x2d5   :  { %v2725_v49 = vpack.c.bf16 %v2880_v47, %v2879_v48 }
 0x2d7   :  { %2727 = vmatprep.subr.msk.bf16.mxu0 %vm3211_vm3, %v2725_v49 }
 0x2d9   :  { %v2947_v50 = vpop.eup %2946 }
 0x2da   :  { %v251_v51 = vsel %vm238_vm4, %v2947_v50, 0.0  ;;  %v2949_v52 = vpop.eup %2948 }
 0x2db   :  { %252 = vadd.xlane.f32.xlu1 %v251_v51  ;;  %v248_v53 = vsel %vm234_vm5, %v2949_v52, 0.0 }
 0x2df   :  { %249 = vadd.xlane.f32.xlu1 %v248_v53 }
 0x2f0   :  { %352 = vrot.lane.b32.xlu1 %v3195_v13, %s3085_s18 }
 0x368   :  { %v253_v54 = vpop.xlane.xlu1 %252 }
 0x369   :  { %2950 = vrcp.f32 %v253_v54 }
 0x36c   :  { %v250_v55 = vpop.xlane.xlu1 %249 }
 0x36d   :  { %2952 = vrcp.f32 %v250_v55 }
 0x370   :  { %v353_v60 = vpop.permute.xlu1 %352 }
 0x373   :  { %v2951_v56 = vpop.eup %2950 }
 0x374   :  { %v257_v57 = vmul.f32 %v2951_v56, %v2947_v50 }
 0x376   :  { %259 = vst.msk [vmem:[%s3774_s10 + $0x8] sm:$0xf] %vm238_vm4, %v257_v57 }
 0x377   :  { %v2953_v58 = vpop.eup %2952 }
 0x378   :  { %v256_v59 = vmul.f32 %v2953_v58, %v2949_v52 }
 0x37a   :  { %258 = vst.msk [vmem:[%s3774_s10] sm:$0xff] %vm234_vm5, %v256_v59  ;;  %2531 = vmatprep.mubr.msk.f32.mxu0 %vm234_vm5, %v256_v59 }
 0x37b   :  { %2532 = vmatmul.mubr.msk.f32.vlgmr.msra.gmra.mrb[8].mxu0 %vm234_vm5, %v257_v57 }
 0x37c   :  { %2730 = vmatpush3.bf16.xpose.msk.msra.mxu0 %vm3211_vm3, %v2725_v49  ;;  %2538 = vmatprep.mubr.msk.f32.mxu0 %vm150_vm2, %v353_v60 }
 0x383   :  { %2539 = vmatmul.mubr.msk.f32.vlgmr.msra.gmra.mrb[10].mxu0 %vm150_vm2, %v355_v61 }
 0x44e   :  { %v2533_v62 = vpop.f32.mrb[8].mxu0 }
 0x44f   :  { %351 = vst.msk [vmem:[#allocation2 + $0x8] sm:$0xf] %vm350_vm9, %v2533_v62  ;;  %v340_v63 = vpop.f32.mrb[9].mxu0 }
 0x450   :  { %349 = vst.msk [vmem:[#allocation2] sm:$0xff] %vm150_vm2, %v340_v63 }
 0x456   :  { %v2540_v0 = vpop.f32.mrb[10].mxu0 }
 0x457   :  { %v440_v1 = vadd.f32 %v2540_v0, %v3224_v27  ;;  %v434_v2 = vpop.f32.mrb[11].mxu0 }
 0x458   :  { %v435_v4 = vadd.f32 %v434_v2, %v3229_v28 }
 0x459   :  { %v446_v5 = vsel %vm238_vm4, %v440_v1, -inf }
 0x45a   :  { %447 = vmax.xlane.f32.xlu0 %v446_v5  ;;  %v443_v7 = vsel %vm234_vm5, %v435_v4, -inf }
 0x45b   :  { %444 = vmax.xlane.f32.xlu1 %v443_v7 }
 0x46c   :  { %2882 = vrot.lane.b32.xlu1 %v3203_v18, %s3087_s23 }
 0x470   :  { %2887 = vrot.lane.b32.xlu0 %v3203_v18, %s3088_s24  ;;  %568 = vrot.lane.b32.xlu1 %v3195_v13, %s3089_s25 }
 0x4e7   :  { %v448_v8 = vpop.xlane.xlu0 %447 }
 0x4e8   :  { %v450_v9 = vsub.f32 %v440_v1, %v448_v8  ;;  %v445_v10 = vpop.xlane.xlu1 %444 }
 0x4e9   :  { %v449_v11 = vsub.f32 %v435_v4, %v445_v10 }
 0x4ea   :  { %v453_v12 = vmul.f32 1.442695, %v450_v9 }
 0x4eb   :  { %v451_v14 = vmul.f32 1.442695, %v449_v11  ;;  %v2888_v15 = vpop.permute.xlu0 %2887 }
 0x4ec   :  { %2954 = vpow2.f32 %v453_v12  ;;  %v2883_v17 = vpop.permute.xlu1 %2882  ;;  %v2890_v19 = vunpack.i.h.bf16 %v2888_v15  ;;  %v2889_v21 = vunpack.i.l.bf16 %v2888_v15 }
 0x4ed   :  { %v2885_v22 = vunpack.i.h.bf16 %v2883_v17  ;;  %v2884_v23 = vunpack.i.l.bf16 %v2883_v17  ;;  %2956 = vpow2.f32 %v451_v14 }
 0x4ee   :  { %v2737_v26 = vpack.c.bf16 %v2890_v19, %v2889_v21 }
 0x4ef   :  { %v2731_v24 = vpack.c.bf16 %v2885_v22, %v2884_v23 }
 0x4f0   :  { %v569_v33 = vpop.permute.xlu1 %568 }
 0x4f1   :  { %2733 = vmatprep.subr.msk.bf16.mxu1 %vm3242_vm8, %v2731_v24 }
 0x4f2   :  { %2736 = vmatpush3.bf16.msk.msra.mxu1 %vm3242_vm8, %v2731_v24 }
 0x4f3   :  { %2739 = vmatprep.subr.msk.bf16.mxu1 %vm3211_vm3, %v2737_v26 }
 0x4f6   :  { %v2955_v29 = vpop.eup %2954 }
 0x4f7   :  { %v458_v30 = vsel %vm238_vm4, %v2955_v29, 0.0  ;;  %v2957_v31 = vpop.eup %2956 }
 0x4f8   :  { %459 = vadd.xlane.f32.xlu1 %v458_v30  ;;  %v455_v32 = vsel %vm234_vm5, %v2957_v31, 0.0 }
 0x4fc   :  { %456 = vadd.xlane.f32.xlu1 %v455_v32 }
 0x50d   :  { %570 = vrot.lane.b32.xlu1 %v3199_v16, %s3089_s25 }
 0x585   :  { %v460_v34 = vpop.xlane.xlu1 %459 }
 0x586   :  { %2958 = vrcp.f32 %v460_v34 }
 0x589   :  { %v457_v35 = vpop.xlane.xlu1 %456 }
 0x58a   :  { %2960 = vrcp.f32 %v457_v35 }
 0x58d   :  { %v571_v40 = vpop.permute.xlu1 %570 }
 0x590   :  { %v2959_v36 = vpop.eup %2958 }
 0x591   :  { %v464_v37 = vmul.f32 %v2959_v36, %v2955_v29 }
 0x593   :  { %2334 = vst.msk [vmem:[%s3774_s10 + $0x18] sm:$0xf] %vm238_vm4, %v464_v37 }
 0x594   :  { %v2961_v38 = vpop.eup %2960 }
 0x595   :  { %v463_v39 = vmul.f32 %v2961_v38, %v2957_v31  ;;  %v3355_v38 = vrot.slane %v3205_v20, 4 }
 0x597   :  { %2333 = vst.msk [vmem:[%s3774_s10 + $0x10] sm:$0xff] %vm234_vm5, %v463_v39  ;;  %2545 = vmatprep.mubr.msk.f32.mxu1 %vm234_vm5, %v463_v39  ;;  %v1001_v39 = vrot.slane %v3199_v16, 4 }
 0x598   :  { %2546 = vmatmul.mubr.msk.f32.vlgmr.msra.gmra.mrb[0].mxu1 %vm234_vm5, %v464_v37 }
 0x599   :  { %2742 = vmatpush3.bf16.xpose.msk.msra.mxu1 %vm3211_vm3, %v2737_v26  ;;  %2552 = vmatprep.mubr.msk.f32.mxu1 %vm150_vm2, %v569_v33 }
 0x5a0   :  { %2553 = vmatmul.mubr.msk.f32.vlgmr.msra.gmra.mrb[2].mxu1 %vm150_vm2, %v571_v40  ;;  %v3360_v40 = vsel %vm271_vm6, %v1001_v39, %v3355_v38 }
 0x66b   :  { %v3306_v41 = vpop.f32.mrb[0].mxu1 }
 0x66c   :  { %v3308_v42 = vpop.f32.mrb[1].mxu1 }
 0x673   :  { %v2554_v43 = vpop.f32.mrb[2].mxu1 }
 0x674   :  { %v656_v45 = vadd.f32 %v2554_v43, %v3224_v27  ;;  %v650_v46 = vpop.f32.mrb[3].mxu1  ;;  %v3364_v43 = vpack.i.bf16 %v3355_v38, %v3360_v40 }
 0x675   :  { %v651_v47 = vadd.f32 %v650_v46, %v3229_v28 }
 0x676   :  { %v662_v48 = vsel %vm238_vm4, %v656_v45, -inf }
 0x677   :  { %663 = vmax.xlane.f32.xlu0 %v662_v48  ;;  %v659_v49 = vsel %vm234_vm5, %v651_v47, -inf }
 0x678   :  { %660 = vmax.xlane.f32.xlu1 %v659_v49 }
 0x704   :  { %v664_v50 = vpop.xlane.xlu0 %663 }
 0x705   :  { %v666_v51 = vsub.f32 %v656_v45, %v664_v50  ;;  %v661_v52 = vpop.xlane.xlu1 %660 }
 0x706   :  { %v665_v53 = vsub.f32 %v651_v47, %v661_v52 }
 0x707   :  { %v669_v54 = vmul.f32 1.442695, %v666_v51 }
 0x708   :  { %v667_v55 = vmul.f32 1.442695, %v665_v53 }
 0x709   :  { %2962 = vpow2.f32 %v669_v54 }
 0x70a   :  { %2964 = vpow2.f32 %v667_v55 }
 0x713   :  { %v2963_v56 = vpop.eup %2962 }
 0x714   :  { %v2965_v57 = vpop.eup %2964  ;;  %v674_v58 = vsel %vm238_vm4, %v2963_v56, 0.0 }
 0x715   :  { %675 = vadd.xlane.f32.xlu1 %v674_v58  ;;  %v671_v59 = vsel %vm234_vm5, %v2965_v57, 0.0 }
 0x716   :  { %672 = vadd.xlane.f32.xlu0 %v671_v59 }
 0x726   :  { %2897 = vrot.lane.b32.xlu1 %v3203_v18, %s3090_s29 }
 0x72a   :  { %784 = vrot.lane.b32.xlu1 %v3195_v13, %s3091_s30 }
 0x72c   :  { %2892 = vrot.lane.b32.xlu0 %v3203_v18, %s3092_s12 }
 0x730   :  { %786 = vrot.lane.b32.xlu0 %v3199_v16, %s3091_s30 }
 0x7a2   :  { %v676_v60 = vpop.xlane.xlu1 %675 }
 0x7a3   :  { %2966 = vrcp.f32 %v676_v60  ;;  %v673_v61 = vpop.xlane.xlu0 %672 }
 0x7a4   :  { %2968 = vrcp.f32 %v673_v61 }
 0x7a6   :  { %v2898_v62 = vpop.permute.xlu1 %2897 }
 0x7a7   :  { %v2893_v63 = vpop.permute.xlu0 %2892  ;;  %v2900_v0 = vunpack.i.h.bf16 %v2898_v62  ;;  %v2899_v1 = vunpack.i.l.bf16 %v2898_v62 }
 0x7a8   :  { %v2895_v2 = vunpack.i.h.bf16 %v2893_v63  ;;  %v2894_v4 = vunpack.i.l.bf16 %v2893_v63 }
 0x7a9   :  { %v2749_v7 = vpack.c.bf16 %v2900_v0, %v2899_v1 }
 0x7aa   :  { %v2743_v5 = vpack.c.bf16 %v2895_v2, %v2894_v4  ;;  %v785_v11 = vpop.permute.xlu1 %784 }
 0x7ab   :  { %v787_v12 = vpop.permute.xlu0 %786 }
 0x7ac   :  { %2745 = vmatprep.subr.msk.bf16.mxu0 %vm3242_vm8, %v2743_v5 }
 0x7ad   :  { %v2967_v13 = vpop.eup %2966  ;;  %2748 = vmatpush3.bf16.msk.msra.mxu0 %vm3242_vm8, %v2743_v5 }
 0x7ae   :  { %v2969_v8 = vpop.eup %2968  ;;  %v680_v9 = vmul.f32 %v2967_v13, %v2963_v56  ;;  %2751 = vmatprep.subr.msk.bf16.mxu0 %vm3211_vm3, %v2749_v7 }
 0x7af   :  { %v679_v10 = vmul.f32 %v2969_v8, %v2965_v57 }
 0x7b0   :  { %2343 = vst.msk [vmem:[%s3774_s10 + $0x28] sm:$0xf] %vm238_vm4, %v680_v9 }
 0x7b1   :  { %2342 = vst.msk [vmem:[%s3774_s10 + $0x20] sm:$0xff] %vm234_vm5, %v679_v10  ;;  %2559 = vmatprep.mubr.msk.f32.mxu0 %vm234_vm5, %v679_v10 }
 0x7b2   :  { %2560 = vmatmul.mubr.msk.f32.vlgmr.msra.gmra.mrb[12].mxu0 %vm234_vm5, %v680_v9 }
 0x7b3   :  { %2566 = vmatprep.mubr.msk.f32.mxu0 %vm150_vm2, %v785_v11 }
 0x7b6   :  { %2754 = vmatpush3.bf16.xpose.msk.msra.mxu0 %vm3211_vm3, %v2749_v7 }
 0x7bd   :  { %2567 = vmatmul.mubr.msk.f32.vlgmr.msra.gmra.mrb[14].mxu0 %vm150_vm2, %v787_v12 }
 0x885   :  { %v3344_v14 = vpop.f32.mrb[12].mxu0 }
 0x886   :  { %v3346_v15 = vpop.f32.mrb[13].mxu0 }
 0x890   :  { %v2568_v17 = vpop.f32.mrb[14].mxu0 }
 0x891   :  { %v872_v19 = vadd.f32 %v2568_v17, %v3224_v27  ;;  %v866_v21 = vpop.f32.mrb[15].mxu0 }
 0x892   :  { %v867_v22 = vadd.f32 %v866_v21, %v3229_v28 }
 0x893   :  { %v878_v23 = vsel %vm238_vm4, %v872_v19, -inf }
 0x894   :  { %879 = vmax.xlane.f32.xlu0 %v878_v23  ;;  %v875_v24 = vsel %vm234_vm5, %v867_v22, -inf }
 0x895   :  { %876 = vmax.xlane.f32.xlu1 %v875_v24 }
 0x921   :  { %v880_v26 = vpop.xlane.xlu0 %879 }
 0x922   :  { %v882_v29 = vsub.f32 %v872_v19, %v880_v26  ;;  %v877_v30 = vpop.xlane.xlu1 %876 }
 0x923   :  { %v881_v31 = vsub.f32 %v867_v22, %v877_v30 }
 0x924   :  { %v885_v32 = vmul.f32 1.442695, %v882_v29 }
 0x925   :  { %v883_v33 = vmul.f32 1.442695, %v881_v31 }
 0x926   :  { %2970 = vpow2.f32 %v885_v32 }
 0x927   :  { %2972 = vpow2.f32 %v883_v33 }
 0x930   :  { %v2971_v34 = vpop.eup %2970 }
 0x931   :  { %v2973_v35 = vpop.eup %2972  ;;  %v890_v36 = vsel %vm238_vm4, %v2971_v34, 0.0 }
 0x932   :  { %891 = vadd.xlane.f32.xlu1 %v890_v36  ;;  %v887_v37 = vsel %vm234_vm5, %v2973_v35, 0.0 }
 0x933   :  { %888 = vadd.xlane.f32.xlu0 %v887_v37 }
 0x943   :  { %2907 = vrot.lane.b32.xlu1 %v3364_v43, %s3082_s3 }
 0x949   :  { %2902 = vrot.lane.b32.xlu0 %v3203_v18, %s3093_s19 }
 0x9bf   :  { %v892_v45 = vpop.xlane.xlu1 %891 }
 0x9c0   :  { %2974 = vrcp.f32 %v892_v45  ;;  %v889_v20 = vpop.xlane.xlu0 %888 }
 0x9c1   :  { %2976 = vrcp.f32 %v889_v20 }
 0x9c3   :  { %v2908_v16 = vpop.permute.xlu1 %2907 }
 0x9c4   :  { %v2903_v46 = vpop.permute.xlu0 %2902  ;;  %v2910_v47 = vunpack.i.h.bf16 %v2908_v16  ;;  %v2909_v48 = vunpack.i.l.bf16 %v2908_v16 }
 0x9c5   :  { %v2905_v49 = vunpack.i.h.bf16 %v2903_v46  ;;  %v2904_v50 = vunpack.i.l.bf16 %v2903_v46 }
 0x9c6   :  { %v2761_v52 = vpack.c.bf16 %v2910_v47, %v2909_v48 }
 0x9c7   :  { %v2755_v51 = vpack.c.bf16 %v2905_v49, %v2904_v50 }
 0x9c9   :  { %2757 = vmatprep.subr.msk.bf16.mxu1 %vm3242_vm8, %v2755_v51 }
 0x9ca   :  { %v2975_v53 = vpop.eup %2974  ;;  %2760 = vmatpush3.bf16.msk.msra.mxu1 %vm3242_vm8, %v2755_v51 }
 0x9cb   :  { %v2977_v18 = vpop.eup %2976  ;;  %v896_v54 = vmul.f32 %v2975_v53, %v2971_v34  ;;  %2763 = vmatprep.subr.msk.bf16.mxu1 %vm3211_vm3, %v2761_v52 }
 0x9cc   :  { %v895_v55 = vmul.f32 %v2977_v18, %v2973_v35 }
 0x9cd   :  { %2352 = vst.msk [vmem:[%s3774_s10 + $0x38] sm:$0xf] %vm238_vm4, %v896_v54 }
 0x9ce   :  { %2351 = vst.msk [vmem:[%s3774_s10 + $0x30] sm:$0xff] %vm234_vm5, %v895_v55  ;;  %2573 = vmatprep.mubr.msk.f32.mxu1 %vm234_vm5, %v895_v55 }
 0x9cf   :  { %2574 = vmatmul.mubr.msk.f32.vlgmr.msra.gmra.mrb[4].mxu1 %vm234_vm5, %v896_v54 }
 0x9d0   :  { %2580 = vmatprep.mubr.msk.f32.mxu1 %vm150_vm2, %v3360_v40 }
 0x9d3   :  { %2766 = vmatpush3.bf16.xpose.msk.msra.mxu1 %vm3211_vm3, %v2761_v52 }
 0x9da   :  { %2581 = vmatmul.mubr.msk.f32.vlgmr.msra.gmra.mrb[6].mxu1 %vm150_vm2, %v3355_v38 }
 0xaa2   :  { %v3392_v56 = vpop.f32.mrb[4].mxu1 }
 0xaa3   :  { %v3394_v57 = vpop.f32.mrb[5].mxu1 }
 0xaad   :  { %v2582_v58 = vpop.f32.mrb[6].mxu1 }
 0xaae   :  { %v1088_v59 = vadd.f32 %v2582_v58, %v3224_v27  ;;  %v1082_v60 = vpop.f32.mrb[7].mxu1 }
 0xaaf   :  { %v1083_v61 = vadd.f32 %v1082_v60, %v3229_v28 }
 0xab0   :  { %v1094_v62 = vsel %vm238_vm4, %v1088_v59, -inf }
 0xab1   :  { %1095 = vmax.xlane.f32.xlu0 %v1094_v62  ;;  %v1091_v63 = vsel %vm234_vm5, %v1083_v61, -inf }
 0xab2   :  { %1092 = vmax.xlane.f32.xlu1 %v1091_v63 }
 0xb3e   :  { %v1096_v0 = vpop.xlane.xlu0 %1095 }
 0xb3f   :  { %v1098_v1 = vsub.f32 %v1088_v59, %v1096_v0  ;;  %v1093_v2 = vpop.xlane.xlu1 %1092 }
 0xb40   :  { %v1097_v4 = vsub.f32 %v1083_v61, %v1093_v2 }
 0xb41   :  { %v1101_v5 = vmul.f32 1.442695, %v1098_v1 }
 0xb42   :  { %v1099_v7 = vmul.f32 1.442695, %v1097_v4 }
 0xb43   :  { %2978 = vpow2.f32 %v1101_v5 }
 0xb44   :  { %2980 = vpow2.f32 %v1099_v7 }
 0xb4d   :  { %v2979_v13 = vpop.eup %2978 }
 0xb4e   :  { %v2981_v8 = vpop.eup %2980  ;;  %v1106_v9 = vsel %vm238_vm4, %v2979_v13, 0.0 }
 0xb4f   :  { %1107 = vadd.xlane.f32.xlu1 %v1106_v9  ;;  %v1103_v10 = vsel %vm234_vm5, %v2981_v8, 0.0 }
 0xb50   :  { %1104 = vadd.xlane.f32.xlu0 %v1103_v10 }
 0xb60   :  { %2917 = vrot.lane.b32.xlu1 %v3364_v43, %s3084_s0 }
 0xb64   :  { %1206 = vrot.lane.b32.xlu1 %v3360_v40, %s3085_s18 }
 0xb66   :  { %2912 = vrot.lane.b32.xlu0 %v3364_v43, %s3083_s17 }
 0xb6a   :  { %1208 = vrot.lane.b32.xlu0 %v3355_v38, %s3085_s18 }
 0xbdc   :  { %v1108_v11 = vpop.xlane.xlu1 %1107 }
 0xbdd   :  { %2982 = vrcp.f32 %v1108_v11  ;;  %v1105_v12 = vpop.xlane.xlu0 %1104 }
 0xbde   :  { %2984 = vrcp.f32 %v1105_v12 }
 0xbe0   :  { %v2918_v17 = vpop.permute.xlu1 %2917 }
 0xbe1   :  { %v2913_v19 = vpop.permute.xlu0 %2912  ;;  %v2920_v21 = vunpack.i.h.bf16 %v2918_v17  ;;  %v2919_v22 = vunpack.i.l.bf16 %v2918_v17 }
 0xbe2   :  { %v2915_v23 = vunpack.i.h.bf16 %v2913_v19  ;;  %v2914_v24 = vunpack.i.l.bf16 %v2913_v19 }
 0xbe3   :  { %v2773_v29 = vpack.c.bf16 %v2920_v21, %v2919_v22 }
 0xbe4   :  { %v2767_v26 = vpack.c.bf16 %v2915_v23, %v2914_v24  ;;  %v1207_v34 = vpop.permute.xlu1 %1206 }
 0xbe5   :  { %v1209_v35 = vpop.permute.xlu0 %1208 }
 0xbe6   :  { %2769 = vmatprep.subr.msk.bf16.mxu0 %vm3242_vm8, %v2767_v26 }
 0xbe7   :  { %v2983_v30 = vpop.eup %2982  ;;  %2772 = vmatpush3.bf16.msk.msra.mxu0 %vm3242_vm8, %v2767_v26 }
 0xbe8   :  { %v2985_v31 = vpop.eup %2984  ;;  %v1112_v32 = vmul.f32 %v2983_v30, %v2979_v13  ;;  %2775 = vmatprep.subr.msk.bf16.mxu0 %vm3211_vm3, %v2773_v29 }
 0xbe9   :  { %v1111_v33 = vmul.f32 %v2985_v31, %v2981_v8 }
 0xbea   :  { %2361 = vst.msk [vmem:[%s3774_s10 + $0x48] sm:$0xf] %vm238_vm4, %v1112_v32 }
 0xbeb   :  { %2360 = vst.msk [vmem:[%s3774_s10 + $0x40] sm:$0xff] %vm234_vm5, %v1111_v33  ;;  %2587 = vmatprep.mubr.msk.f32.mxu0 %vm234_vm5, %v1111_v33 }
 0xbec   :  { %2588 = vmatmul.mubr.msk.f32.vlgmr.msra.gmra.mrb[16].mxu0 %vm234_vm5, %v1112_v32 }
 0xbed   :  { %2594 = vmatprep.mubr.msk.f32.mxu0 %vm150_vm2, %v1207_v34 }
 0xbf0   :  { %2778 = vmatpush3.bf16.xpose.msk.msra.mxu0 %vm3211_vm3, %v2773_v29 }
 0xbf7   :  { %2595 = vmatmul.mubr.msk.f32.vlgmr.msra.gmra.mrb[18].mxu0 %vm150_vm2, %v1209_v35 }
 0xcbf   :  { %v2589_v36 = vpop.f32.mrb[16].mxu0 }
 0xcc0   :  { %1205 = vst.msk [vmem:[#allocation2 + $0x14] sm:$0xf] %vm350_vm9, %v2589_v36  ;;  %v1195_v37 = vpop.f32.mrb[17].mxu0 }
 0xcc1   :  { %1204 = vst.msk [vmem:[#allocation2 + $0xc] sm:$0xff] %vm150_vm2, %v1195_v37 }
 0xcca   :  { %v2596_v39 = vpop.f32.mrb[18].mxu0 }
 0xccb   :  { %v1294_v45 = vadd.f32 %v2596_v39, %v3224_v27  ;;  %v1288_v20 = vpop.f32.mrb[19].mxu0 }
 0xccc   :  { %v1289_v16 = vadd.f32 %v1288_v20, %v3229_v28 }
 0xccd   :  { %v1300_v46 = vsel %vm238_vm4, %v1294_v45, -inf }
 0xcce   :  { %1301 = vmax.xlane.f32.xlu0 %v1300_v46  ;;  %v1297_v47 = vsel %vm234_vm5, %v1289_v16, -inf }
 0xccf   :  { %1298 = vmax.xlane.f32.xlu1 %v1297_v47 }
 0xd5b   :  { %v1302_v48 = vpop.xlane.xlu0 %1301 }
 0xd5c   :  { %v1304_v49 = vsub.f32 %v1294_v45, %v1302_v48  ;;  %v1299_v50 = vpop.xlane.xlu1 %1298 }
 0xd5d   :  { %v1303_v51 = vsub.f32 %v1289_v16, %v1299_v50 }
 0xd5e   :  { %v1307_v52 = vmul.f32 1.442695, %v1304_v49 }
 0xd5f   :  { %v1305_v53 = vmul.f32 1.442695, %v1303_v51 }
 0xd60   :  { %2986 = vpow2.f32 %v1307_v52 }
 0xd61   :  { %2988 = vpow2.f32 %v1305_v53 }
 0xd6a   :  { %v2987_v18 = vpop.eup %2986 }
 0xd6b   :  { %v2989_v54 = vpop.eup %2988  ;;  %v1312_v55 = vsel %vm238_vm4, %v2987_v18, 0.0 }
 0xd6c   :  { %1313 = vadd.xlane.f32.xlu1 %v1312_v55  ;;  %v1309_v58 = vsel %vm234_vm5, %v2989_v54, 0.0 }
 0xd6d   :  { %1310 = vadd.xlane.f32.xlu0 %v1309_v58 }
 0xd7d   :  { %2927 = vrot.lane.b32.xlu1 %v3364_v43, %s3088_s24 }
 0xd81   :  { %1420 = vrot.lane.b32.xlu1 %v3360_v40, %s3089_s25 }
 0xd83   :  { %2922 = vrot.lane.b32.xlu0 %v3364_v43, %s3087_s23 }
 0xd87   :  { %1422 = vrot.lane.b32.xlu0 %v3355_v38, %s3089_s25 }
 0xdf9   :  { %v1314_v59 = vpop.xlane.xlu1 %1313 }
 0xdfa   :  { %2990 = vrcp.f32 %v1314_v59  ;;  %v1311_v60 = vpop.xlane.xlu0 %1310 }
 0xdfb   :  { %2992 = vrcp.f32 %v1311_v60 }
 0xdfd   :  { %v2928_v61 = vpop.permute.xlu1 %2927 }
 0xdfe   :  { %v2923_v62 = vpop.permute.xlu0 %2922  ;;  %v2930_v63 = vunpack.i.h.bf16 %v2928_v61  ;;  %v2929_v0 = vunpack.i.l.bf16 %v2928_v61 }
 0xdff   :  { %v2925_v1 = vunpack.i.h.bf16 %v2923_v62  ;;  %v2924_v2 = vunpack.i.l.bf16 %v2923_v62 }
 0xe00   :  { %v2785_v5 = vpack.c.bf16 %v2930_v63, %v2929_v0 }
 0xe01   :  { %v2779_v4 = vpack.c.bf16 %v2925_v1, %v2924_v2  ;;  %v1421_v10 = vpop.permute.xlu1 %1420 }
 0xe02   :  { %v1423_v11 = vpop.permute.xlu0 %1422 }
 0xe03   :  { %2781 = vmatprep.subr.msk.bf16.mxu1 %vm3242_vm8, %v2779_v4 }
 0xe04   :  { %v2991_v7 = vpop.eup %2990  ;;  %2784 = vmatpush3.bf16.msk.msra.mxu1 %vm3242_vm8, %v2779_v4 }
 0xe05   :  { %v2993_v13 = vpop.eup %2992  ;;  %v1318_v8 = vmul.f32 %v2991_v7, %v2987_v18  ;;  %2787 = vmatprep.subr.msk.bf16.mxu1 %vm3211_vm3, %v2785_v5 }
 0xe06   :  { %v1317_v9 = vmul.f32 %v2993_v13, %v2989_v54 }
 0xe07   :  { %2370 = vst.msk [vmem:[%s3774_s10 + $0x58] sm:$0xf] %vm238_vm4, %v1318_v8 }
 0xe08   :  { %2369 = vst.msk [vmem:[%s3774_s10 + $0x50] sm:$0xff] %vm234_vm5, %v1317_v9  ;;  %2601 = vmatprep.mubr.msk.f32.mxu1 %vm234_vm5, %v1317_v9 }
 0xe09   :  { %2602 = vmatmul.mubr.msk.f32.vlgmr.msra.gmra.mrb[8].mxu1 %vm234_vm5, %v1318_v8 }
 0xe0a   :  { %2608 = vmatprep.mubr.msk.f32.mxu1 %vm150_vm2, %v1421_v10 }
 0xe0d   :  { %2790 = vmatpush3.bf16.xpose.msk.msra.mxu1 %vm3211_vm3, %v2785_v5 }
 0xe14   :  { %2609 = vmatmul.mubr.msk.f32.vlgmr.msra.gmra.mrb[10].mxu1 %vm150_vm2, %v1423_v11 }
 0xedc   :  { %v3466_v12 = vpop.f32.mrb[8].mxu1 }
 0xedd   :  { %v3468_v17 = vpop.f32.mrb[9].mxu1 }
 0xee7   :  { %v2610_v19 = vpop.f32.mrb[10].mxu1 }
 0xee8   :  { %v1508_v21 = vadd.f32 %v2610_v19, %v3224_v27  ;;  %v1502_v22 = vpop.f32.mrb[11].mxu1 }
 0xee9   :  { %v1503_v23 = vadd.f32 %v1502_v22, %v3229_v28 }
 0xeea   :  { %v1514_v24 = vsel %vm238_vm4, %v1508_v21, -inf }
 0xeeb   :  { %1515 = vmax.xlane.f32.xlu0 %v1514_v24  ;;  %v1511_v26 = vsel %vm234_vm5, %v1503_v23, -inf }
 0xeec   :  { %1512 = vmax.xlane.f32.xlu1 %v1511_v26 }
 0xf78   :  { %v1516_v29 = vpop.xlane.xlu0 %1515 }
 0xf79   :  { %v1518_v30 = vsub.f32 %v1508_v21, %v1516_v29  ;;  %v1513_v31 = vpop.xlane.xlu1 %1512 }
 0xf7a   :  { %v1517_v32 = vsub.f32 %v1503_v23, %v1513_v31 }
 0xf7b   :  { %v1521_v33 = vmul.f32 1.442695, %v1518_v30  ;;  %v1854_v30 = vld [vmem:[%s3768_s4 + $0x18] sm:$0xff] }
 0xf7c   :  { %v1519_v34 = vmul.f32 1.442695, %v1517_v32 }
 0xf7d   :  { %2994 = vpow2.f32 %v1521_v33  ;;  %v2813_v33 = vpack.c.bf16 %v1854_v30, %v1853_v44 }
 0xf7e   :  { %2996 = vpow2.f32 %v1519_v34 }
 0xf87   :  { %v2995_v35 = vpop.eup %2994 }
 0xf88   :  { %v2997_v36 = vpop.eup %2996  ;;  %v1526_v37 = vsel %vm238_vm4, %v2995_v35, 0.0 }
 0xf89   :  { %1527 = vadd.xlane.f32.xlu1 %v1526_v37  ;;  %v1523_v39 = vsel %vm234_vm5, %v2997_v36, 0.0 }
 0xf8a   :  { %1524 = vadd.xlane.f32.xlu0 %v1523_v39 }
 0xf9a   :  { %2937 = vrot.lane.b32.xlu1 %v3364_v43, %s3090_s29 }
 0xf9e   :  { %1634 = vrot.lane.b32.xlu1 %v3360_v40, %s3091_s30 }
 0xfa0   :  { %2932 = vrot.lane.b32.xlu0 %v3364_v43, %s3092_s12  ;;  %s3094_s12 = smov 8  }
 0xfa4   :  { %1636 = vrot.lane.b32.xlu0 %v3355_v38, %s3091_s30 }
0x1016   :  { %v1528_v45 = vpop.xlane.xlu1 %1527 }
0x1017   :  { %2998 = vrcp.f32 %v1528_v45  ;;  %v1525_v20 = vpop.xlane.xlu0 %1524 }
0x1018   :  { %3000 = vrcp.f32 %v1525_v20 }
0x101a   :  { %v2938_v16 = vpop.permute.xlu1 %2937 }
0x101b   :  { %v2933_v46 = vpop.permute.xlu0 %2932  ;;  %v2940_v47 = vunpack.i.h.bf16 %v2938_v16  ;;  %v2939_v48 = vunpack.i.l.bf16 %v2938_v16  ;;  %v1855_v16 = vlaneseq }
0x101c   :  { %v2935_v49 = vunpack.i.h.bf16 %v2933_v46  ;;  %v2934_v50 = vunpack.i.l.bf16 %v2933_v46 }
0x101d   :  { %v2797_v52 = vpack.c.bf16 %v2940_v47, %v2939_v48  ;;  %v3581_v46 = vshrl.u32 %v1855_v16, 7  ;;  %v3587_v48 = vld [vmem:[%s3772_s8] sm:$0x3f]  ;;  %v2126_v16 = vld [vmem:[%s3771_s7 + $0x18] sm:$0xff] }
0x101e   :  { %v2791_v51 = vpack.c.bf16 %v2935_v49, %v2934_v50  ;;  %v1635_v54 = vpop.permute.xlu1 %1634 }
0x101f   :  { %v1637_v55 = vpop.permute.xlu0 %1636  ;;  %v1857_v47 = vsub.s32 0, %v3581_v46  ;;  %v1993_v44 = vsub.s32 1, %v3581_v46  ;;  %v2000_v30 = vsub.s32 2, %v3581_v46 }
0x1020   :  { %2793 = vmatprep.subr.msk.bf16.mxu0 %vm3242_vm8, %v2791_v51 }
0x1021   :  { %v2999_v40 = vpop.eup %2998  ;;  %2796 = vmatpush3.bf16.msk.msra.mxu0 %vm3242_vm8, %v2791_v51  ;;  %v1858_v49 = vrot.slane %v3587_v48, %v1857_v47  ;;  %v3028_v51 = vld [vmem:[%s3765_s1] sm:$0xff] }
0x1022   :  { %v3001_v38 = vpop.eup %3000  ;;  %v1532_v53 = vmul.f32 %v2999_v40, %v2995_v35  ;;  %2799 = vmatprep.subr.msk.bf16.mxu0 %vm3211_vm3, %v2797_v52 }
0x1023   :  { %v1531_v18 = vmul.f32 %v3001_v38, %v2997_v36 }
0x1024   :  { %2379 = vst.msk [vmem:[%s3774_s10 + $0x68] sm:$0xf] %vm238_vm4, %v1532_v53 }
0x1025   :  { %2378 = vst.msk [vmem:[%s3774_s10 + $0x60] sm:$0xff] %vm234_vm5, %v1531_v18  ;;  %2615 = vmatprep.mubr.msk.f32.mxu0 %vm234_vm5, %v1531_v18 }
0x1026   :  { %2616 = vmatmul.mubr.msk.f32.vlgmr.msra.gmra.mrb[20].mxu0 %vm234_vm5, %v1532_v53 }
0x1027   :  { %2622 = vmatprep.mubr.msk.f32.mxu0 %vm150_vm2, %v1635_v54 }
0x102a   :  { %2802 = vmatpush3.bf16.xpose.msk.msra.mxu0 %vm3211_vm3, %v2797_v52 }
0x102b   :  { %2815 = vmatprep.subr.bf16.mxu0 %v3079_v3 }
0x1031   :  { %2623 = vmatmul.mubr.msk.f32.vlgmr.msra.gmra.mrb[22].mxu0 %vm150_vm2, %v1637_v55 }
0x1032   :  { %2657 = vmatprep.mubr.msk.f32.mxu0 %vm3080_vm0, %v3081_v6 }
0x10f9   :  { %v3507_v58 = vpop.f32.mrb[20].mxu0 }
0x10fa   :  { %v1615_v59 = vpop.f32.mrb[21].mxu0 }
0x1104   :  { %v2624_v60 = vpop.f32.mrb[22].mxu0 }
0x1105   :  { %v1722_v61 = vadd.f32 %v2624_v60, %v3224_v27  ;;  %v1716_v62 = vpop.f32.mrb[23].mxu0 }
0x1106   :  { %v1717_v63 = vadd.f32 %v1716_v62, %v3229_v28 }
0x1107   :  { %v1728_v25 = vsel %vm238_vm4, %v1722_v61, -inf }
0x1108   :  { %1729 = vmax.xlane.f32.xlu0 %v1728_v25  ;;  %v1725_v0 = vsel %vm234_vm5, %v1717_v63, -inf }
0x1109   :  { %1726 = vmax.xlane.f32.xlu1 %v1725_v0 }
0x1195   :  { %v1730_v1 = vpop.xlane.xlu0 %1729 }
0x1196   :  { %v1732_v2 = vsub.f32 %v1722_v61, %v1730_v1  ;;  %v1727_v4 = vpop.xlane.xlu1 %1726 }
0x1197   :  { %v1731_v5 = vsub.f32 %v1717_v63, %v1727_v4  ;;  %v3029_v63 = vld [vmem:[%s3765_s1 + $0x8] sm:$0xff] }
0x1198   :  { %v1735_v7 = vmul.f32 1.442695, %v1732_v2 }
0x1199   :  { %v1733_v13 = vmul.f32 1.442695, %v1731_v5 }
0x119a   :  { %3002 = vpow2.f32 %v1735_v7  ;;  %v3030_v7 = vld [vmem:[%s3765_s1 + $0x10] sm:$0xff] }
0x119b   :  { %3004 = vpow2.f32 %v1733_v13 }
0x11a4   :  { %v3003_v8 = vpop.eup %3002 }
0x11a5   :  { %v3005_v9 = vpop.eup %3004  ;;  %v1740_v27 = vsel %vm238_vm4, %v3003_v8, 0.0 }
0x11a6   :  { %1741 = vadd.xlane.f32.xlu1 %v1740_v27  ;;  %v1737_v28 = vsel %vm234_vm5, %v3005_v9, 0.0 }
0x11a7   :  { %1738 = vadd.xlane.f32.xlu0 %v1737_v28  ;;  %v2005_v28 = vld [vmem:[%s3769_s5] sm:$0xff] }
0x11b7   :  { %558 = vrot.lane.b32.xlu1 %v3308_v42, %s3094_s12 }
0x11bb   :  { %774 = vrot.lane.b32.xlu1 %v3346_v15, %s3095_s13 }
0x11bd   :  { %2942 = vrot.lane.b32.xlu0 %v3364_v43, %s3093_s19 }
0x11bf   :  { %560 = vrot.lane.b32.xlu1 %v3306_v41, %s3094_s12 }
0x11c1   :  { %990 = vrot.lane.b32.xlu0 %v3394_v57, %s3096_s14 }
0x11c3   :  { %776 = vrot.lane.b32.xlu1 %v3344_v14, %s3095_s13 }
0x11c5   :  { %1412 = vrot.lane.b32.xlu0 %v3468_v17, %s3094_s12  ;;  %v1852_v17 = vld [vmem:[%s3768_s4 + $0x8] sm:$0xff] }
0x11c7   :  { %992 = vrot.lane.b32.xlu1 %v3392_v56, %s3096_s14 }
0x11c9   :  { %1626 = vrot.lane.b32.xlu0 %v1615_v59, %s3095_s13 }
0x11cb   :  { %1414 = vrot.lane.b32.xlu1 %v3466_v12, %s3094_s12  ;;  %v1851_v12 = vld [vmem:[%s3768_s4] sm:$0xff] }
0x11cc   :  { %v2810_v29 = vpack.c.bf16 %v1852_v17, %v1851_v12 }
0x1233   :  { %v1742_v42 = vpop.xlane.xlu1 %1741 }
0x1234   :  { %3006 = vrcp.f32 %v1742_v42  ;;  %v1739_v41 = vpop.xlane.xlu0 %1738  ;;  %v2006_v42 = vld [vmem:[%s3769_s5 + $0x8] sm:$0xff] }
0x1235   :  { %3008 = vrcp.f32 %v1739_v41  ;;  %v2816_v41 = vpack.c.bf16 %v2006_v42, %v2005_v28 }
0x1237   :  { %v559_v15 = vpop.permute.xlu1 %558  ;;  %2817 = vmatpush3.bf16.msra.mxu0 %v2816_v41 }
0x1238   :  { %565 = vst.msk [vmem:[#allocation2] sm:$0xff] %vm564_vm10, %v559_v15  ;;  %v2943_v14 = vpop.permute.xlu0 %2942  ;;  %v2007_v15 = vld [vmem:[%s3769_s5 + $0x10] sm:$0xff]  ;;  %2818 = vmatprep.subr.bf16.mxu0 %v3079_v3 }
0x1239   :  { %v2945_v43 = vunpack.i.h.bf16 %v2943_v14  ;;  %v2944_v57 = vunpack.i.l.bf16 %v2943_v14  ;;  %v2008_v14 = vld [vmem:[%s3769_s5 + $0x18] sm:$0xff] }
0x123b   :  { %v2803_v10 = vpack.c.bf16 %v2945_v43, %v2944_v57  ;;  %v775_v56 = vpop.permute.xlu1 %774  ;;  %v2819_v43 = vpack.c.bf16 %v2008_v14, %v2007_v15  ;;  %v2395_v14 = vld [vmem:[%s3770_s6] ss:$0 sm:$0xff]  ;;  %s3097_s6 = smov [#allocation5]  }
0x123c   :  { %781 = vst.msk [vmem:[#allocation2] sm:$0xff] %vm780_vm11, %v775_v56  ;;  %v991_v11 = vpop.permute.xlu0 %990  ;;  %s2301_s18 = sshll.u32 %s3097_s6, 4  ;;  %s2302_s18 = int_to_ptr.vmem [resolvable:$true] %s2301_s18 }
0x123d   :  { %997 = vst.msk [vmem:[#allocation2] sm:$0xff] %vm996_vm12, %v991_v11  ;;  %2805 = vmatprep.subr.msk.bf16.mxu1 %vm3242_vm8, %v2803_v10  ;;  %2820 = vmatpush3.bf16.msra.mxu0 %v2819_v43  ;;  %s3031_s26 = scalar_lea.vmem %s2302_s18, 384  ;;  %p3036_p1 = scmp.lt.s32.totalorder %s2302_s18, %s2302_s18 }
0x123e   :  { %v3007_v19 = vpop.eup %3006  ;;  %2808 = vmatpush3.bf16.msk.msra.mxu1 %vm3242_vm8, %v2803_v10  ;;  %p3032_p0 = scmp.ne.s32.totalorder %s2302_s18, %s3031_s26  ;;  %p3037_p2 = scmp.lt.s32.totalorder %s3031_s26, %s3031_s26 }
0x123f   :  { %v3009_v21 = vpop.eup %3008  ;;  %v1746_v22 = vmul.f32 %v3007_v19, %v3003_v8  ;;  %v561_v23 = vpop.permute.xlu1 %560  ;;  %2809 = vmatprep.subr.bf16.mxu1 %v3079_v3 }
0x1240   :  { %567 = vst.msk [vmem:[#allocation2 + $0x8] sm:$0xf] %vm566_vm13, %v561_v23  ;;  %v1413_v24 = vpop.permute.xlu0 %1412  ;;  %v1745_v26 = vmul.f32 %v3009_v21, %v3005_v9  ;;  %p3038_p3 = por %p3037_p2, %p3036_p1 }
0x1241   :  { %2388 = vst.msk [vmem:[%s3774_s10 + $0x78] sm:$0xf] %vm238_vm4, %v1746_v22 }
0x1242   :  { %1418 = vst.msk [vmem:[#allocation2 + $0xc] sm:$0xff] %vm564_vm10, %v1413_v24  ;;  %2629 = vmatprep.mubr.msk.f32.mxu1 %vm234_vm5, %v1745_v26  ;;  %p3039_p4 = pnand %p3038_p3, %p3032_p0 }
0x1243   :  { %2387 = vst.msk [vmem:[%s3774_s10 + $0x70] sm:$0xff] %vm234_vm5, %v1745_v26  ;;  %2630 = vmatmul.mubr.msk.f32.vlgmr.msra.gmra.mrb[12].mxu1 %vm234_vm5, %v1746_v22  ;;  %v777_v31 = vpop.permute.xlu1 %776 }
0x1244   :  { %2811 = vmatpush3.bf16.msra.mxu1 %v2810_v29  ;;  %783 = vst.msk [vmem:[#allocation2 + $0x8] sm:$0xf] %vm782_vm14, %v777_v31  ;;  %v1627_v32 = vpop.permute.xlu0 %1626  ;;  %2640 = vmatprep.mubr.msk.f32.mxu1 %vm3080_vm0, %v3081_v6  ;;  %v1848_v35 = vld [vmem:[#allocation2] sm:$0xff]  ;;  %v3638_v31 = vrot.slane %v3587_v48, %v1993_v44 }
0x1245   :  { %1632 = vst.msk [vmem:[#allocation2 + $0xc] sm:$0xff] %vm780_vm11, %v1627_v32  ;;  %2812 = vmatprep.subr.bf16.mxu1 %v3079_v3 }
0x1247   :  { %v993_v34 = vpop.permute.xlu1 %992 }
0x1248   :  { %2814 = vmatpush3.bf16.msra.mxu1 %v2813_v33  ;;  %999 = vst.msk [vmem:[#allocation2 + $0x8] sm:$0xf] %vm998_vm15, %v993_v34  ;;  %v2001_v34 = vrot.slane %v3587_v48, %v2000_v30 }
0x1249   :  { %2821 = vmatprep.subr.bf16.mxu1 %v3079_v3 }
0x124b   :  { %2641 = vmatmul.mubr.msk.f32.vlgmr.msra.gmra.mrb[14].mxu1 %vm54_vm1, %v1848_v35  ;;  %v1415_v36 = vpop.permute.xlu1 %1414 }
0x124c   :  { %1419 = vst.msk [vmem:[#allocation2 + $0x14] sm:$0xf] %vm566_vm13, %v1415_v36  ;;  %2643 = vmatprep.mubr.msk.f32.mxu1 %vm3080_vm0, %v3081_v6 }
0x1316   :  { %v2631_v37 = vpop.f32.mrb[12].mxu1 }
0x1317   :  { %1842 = vrot.lane.b32.xlu1 %v2631_v37, %s3096_s14  ;;  %v1829_v39 = vpop.f32.mrb[13].mxu1  ;;  %v2123_v37 = vld [vmem:[%s3771_s7] sm:$0xff] }
0x1318   :  { %1840 = vrot.lane.b32.xlu0 %v1829_v39, %s3096_s14  ;;  %v2124_v39 = vld [vmem:[%s3771_s7 + $0x8] sm:$0xff] }
0x131c   :  { %1628 = vrot.lane.b32.xlu0 %v3507_v58, %s3095_s13 }
0x131e   :  { %v1934_v45 = vpop.f32.mrb[14].mxu1 }
0x131f   :  { %v2642_v20 = vpop.f32.mrb[15].mxu1  ;;  %v1935_v50 = vadd.f32 %v1934_v45, %v1858_v49  ;;  %v2125_v45 = vld [vmem:[%s3771_s7 + $0x10] sm:$0xff] }
0x1320   :  { %v2822_v20 = vpack.c.bf16 %v2124_v39, %v2123_v37  ;;  %v2825_v47 = vpack.c.bf16 %v2126_v16, %v2125_v45 }
0x1321   :  { %v1948_v52 = vadd.f32 %v3028_v51, %v1935_v50  ;;  %v2128_v50 = vld [vmem:[%s3771_s7 + $0x28] sm:$0xff] }
0x1322   :  { %2823 = vmatpush3.bf16.msra.mxu1 %v2822_v20  ;;  %v2141_v20 = vsub.s32 3, %v3581_v46 }
0x1323   :  { %v1951_v40 = vsel %vm54_vm1, %v1948_v52, 0.0  ;;  %2824 = vmatprep.subr.bf16.mxu1 %v3079_v3 }
0x1324   :  { %v2142_v16 = vrot.slane %v3587_v48, %v2141_v20 }
0x1326   :  { %2826 = vmatpush3.bf16.msra.mxu1 %v2825_v47 }
0x1327   :  { %2827 = vmatprep.subr.bf16.mxu1 %v3079_v3 }
0x133b   :  { %1952 = vadd.xlane.f32.xlu0 %v1951_v40  ;;  %v2130_v40 = vld [vmem:[%s3771_s7 + $0x38] sm:$0xff] }
0x1389   :  { %v1843_v18 = vpop.permute.xlu1 %1842 }
0x138a   :  { %v1841_v38 = vpop.permute.xlu0 %1840 }
0x138b   :  { %1846 = vst.msk [vmem:[#allocation2 + $0xc] sm:$0xff] %vm996_vm12, %v1841_v38 }
0x138e   :  { %v1629_v53 = vpop.permute.xlu0 %1628 }
0x138f   :  { %1633 = vst.msk [vmem:[#allocation2 + $0x14] sm:$0xf] %vm782_vm14, %v1629_v53  ;;  %v2131_v53 = vld [vmem:[%s3771_s7 + $0x40] sm:$0xff] }
0x1390   :  { %1847 = vst.msk [vmem:[#allocation2 + $0x14] sm:$0xf] %vm998_vm15, %v1843_v18  ;;  %v2132_v18 = vld [vmem:[%s3771_s7 + $0x48] sm:$0xff] }
0x1392   :  { %v1849_v54 = vld [vmem:[#allocation2 + $0x8] sm:$0xff] }
0x1393   :  { %2644 = vmatmul.mubr.msk.f32.gmra.mrb[16].mxu1 %vm54_vm1, %v1849_v54  ;;  %v2834_v54 = vpack.c.bf16 %v2132_v18, %v2131_v53 }
0x1394   :  { %2646 = vmatprep.mubr.msk.f32.mxu1 %vm3080_vm0, %v3081_v6 }
0x1397   :  { %v1850_v55 = vld [vmem:[#allocation2 + $0x10] sm:$0xff] }
0x1398   :  { %2647 = vmatmul.mubr.msk.f32.gmra.mrb[18].mxu1 %vm54_vm1, %v1850_v55  ;;  %v2133_v55 = vld [vmem:[%s3771_s7 + $0x50] sm:$0xff] }
0x1399   :  { %2698 = vmatprep.mubr.msk.f32.mxu1 %vm3080_vm0, %v3081_v6 }
0x13c8   :  { %v1953_v58 = vpop.xlane.xlu0 %1952 }
0x13c9   :  { %v1961_v62 = vmul.f32 0.03125, %v1953_v58  ;;  %v2134_v58 = vld [vmem:[%s3771_s7 + $0x58] sm:$0xff] }
0x13cb   :  { %v1964_v2 = vsub.f32 %v1948_v52, %v1961_v62  ;;  %v2129_v52 = vld [vmem:[%s3771_s7 + $0x30] sm:$0xff] }
0x13cc   :  { %v2831_v38 = vpack.c.bf16 %v2130_v40, %v2129_v52 }
0x13cd   :  { %v1967_v9 = vmul.f32 %v1964_v2, %v1964_v2 }
0x13cf   :  { %v1970_v27 = vsel %vm54_vm1, %v1967_v9, 0.0 }
0x1466   :  { %v1939_v59 = vpop.f32.mrb[16].mxu1 }
0x1467   :  { %v1940_v60 = vadd.f32 %v1939_v59, %v1858_v49  ;;  %v2645_v61 = vpop.f32.mrb[17].mxu1  ;;  %v2837_v59 = vpack.c.bf16 %v2134_v58, %v2133_v55 }
0x1468   :  { %v2136_v61 = vld [vmem:[%s3771_s7 + $0x68] sm:$0xff] }
0x1469   :  { %v1949_v25 = vadd.f32 %v3029_v63, %v1940_v60  ;;  %v2135_v60 = vld [vmem:[%s3771_s7 + $0x60] sm:$0xff]  ;;  %v2137_v63 = vld [vmem:[%s3771_s7 + $0x70] sm:$0xff] }
0x146a   :  { %v2840_v62 = vpack.c.bf16 %v2136_v61, %v2135_v60 }
0x146b   :  { %v1944_v0 = vpop.f32.mrb[18].mxu1  ;;  %v1954_v1 = vsel %vm54_vm1, %v1949_v25, 0.0 }
0x146c   :  { %v1945_v4 = vadd.f32 %v1944_v0, %v1858_v49  ;;  %1955 = vadd.xlane.f32.xlu1 %v1954_v1  ;;  %v2648_v5 = vpop.f32.mrb[19].mxu1  ;;  %v2127_v49 = vld [vmem:[%s3771_s7 + $0x20] sm:$0xff] }
0x146d   :  { %v2828_v51 = vpack.c.bf16 %v2128_v50, %v2127_v49 }
0x146e   :  { %v1950_v13 = vadd.f32 %v3030_v7, %v1945_v4 }
0x146f   :  { %2829 = vmatpush3.bf16.msra.mxu1 %v2828_v51 }
0x1470   :  { %v1957_v8 = vsel %vm54_vm1, %v1950_v13, 0.0  ;;  %2830 = vmatprep.subr.bf16.mxu1 %v3079_v3 }
0x1471   :  { %1958 = vadd.xlane.f32.xlu0 %v1957_v8 }
0x1473   :  { %2832 = vmatpush3.bf16.msra.mxu1 %v2831_v38 }
0x1474   :  { %2833 = vmatprep.subr.bf16.mxu1 %v3079_v3 }
0x1475   :  { %1971 = vadd.xlane.f32.xlu0 %v1970_v27 }
0x1477   :  { %2835 = vmatpush3.bf16.msra.mxu1 %v2834_v54 }
0x1478   :  { %2836 = vmatprep.subr.bf16.mxu1 %v3079_v3 }
0x147b   :  { %2838 = vmatpush3.bf16.msra.mxu1 %v2837_v59 }
0x147c   :  { %2839 = vmatprep.subr.bf16.mxu1 %v3079_v3 }
0x147f   :  { %2841 = vmatpush3.bf16.msra.mxu1 %v2840_v62 }
0x1480   :  { %2842 = vmatprep.subr.bf16.mxu1 %v3079_v3 }
0x14f9   :  { %v1956_v57 = vpop.xlane.xlu1 %1955 }
0x14fa   :  { %v1962_v10 = vmul.f32 0.03125, %v1956_v57 }
0x14fc   :  { %v3625_v56 = vsub.f32 %v1949_v25, %v1962_v10  ;;  %v2138_v25 = vld [vmem:[%s3771_s7 + $0x78] sm:$0xff] }
0x14fd   :  { %v2843_v0 = vpack.c.bf16 %v2138_v25, %v2137_v63 }
0x14fe   :  { %v1959_v11 = vpop.xlane.xlu0 %1958  ;;  %v1968_v12 = vmul.f32 %v3625_v56, %v3625_v56 }
0x14ff   :  { %v1963_v17 = vmul.f32 0.03125, %v1959_v11  ;;  %2844 = vmatpush3.bf16.msra.mxu1 %v2843_v0 }
0x1500   :  { %v1973_v19 = vsel %vm54_vm1, %v1968_v12, 0.0 }
0x1501   :  { %v3630_v21 = vsub.f32 %v1950_v13, %v1963_v17  ;;  %1974 = vadd.xlane.f32.xlu1 %v1973_v19 }
0x1502   :  { %v1972_v22 = vpop.xlane.xlu0 %1971 }
0x1503   :  { %v1979_v23 = vmul.f32 0.03125, %v1972_v22  ;;  %v1969_v24 = vmul.f32 %v3630_v21, %v3630_v21 }
0x1505   :  { %v1982_v26 = vadd.f32 1e-05, %v1979_v23  ;;  %v1976_v29 = vsel %vm54_vm1, %v1969_v24, 0.0 }
0x1506   :  { %1977 = vadd.xlane.f32.xlu0 %v1976_v29 }
0x1507   :  { %3010 = vrsqrt.f32 %v1982_v26 }
0x1511   :  { %v3011_v32 = vpop.eup %3010 }
0x1512   :  { %v1988_v33 = vmul.f32 %v3011_v32, %v1964_v2 }
0x1514   :  { %v1995_v35 = vmul.f32 %v3638_v31, %v1988_v33 }
0x1516   :  { %v3642_v36 = vadd.f32 %v2001_v34, %v1995_v35 }
0x1518   :  { %2658 = vmatmul.mubr.msk.f32.vlgmr.msra.gmra.mrb[24].mxu0 %vm54_vm1, %v3642_v36 }
0x1519   :  { %2660 = vmatprep.mubr.msk.f32.mxu0 %vm3080_vm0, %v3081_v6 }
0x158e   :  { %v1975_v1 = vpop.xlane.xlu1 %1974 }
0x158f   :  { %v1980_v2 = vmul.f32 0.03125, %v1975_v1 }
0x1591   :  { %v1983_v4 = vadd.f32 1e-05, %v1980_v2 }
0x1593   :  { %3012 = vrsqrt.f32 %v1983_v4  ;;  %v1978_v5 = vpop.xlane.xlu0 %1977 }
0x1594   :  { %v1981_v7 = vmul.f32 0.03125, %v1978_v5 }
0x1596   :  { %v1984_v13 = vadd.f32 1e-05, %v1981_v7 }
0x1598   :  { %3014 = vrsqrt.f32 %v1984_v13 }
0x159d   :  { %v3013_v8 = vpop.eup %3012 }
0x159e   :  { %v1989_v3 = vmul.f32 %v3013_v8, %v3625_v56 }
0x15a0   :  { %v1996_v9 = vmul.f32 %v3638_v31, %v1989_v3 }
0x15a2   :  { %v3015_v27 = vpop.eup %3014  ;;  %v2003_v28 = vadd.f32 %v2001_v34, %v1996_v9 }
0x15a3   :  { %v1990_v42 = vmul.f32 %v3015_v27, %v3630_v21 }
0x15a4   :  { %2661 = vmatmul.mubr.msk.f32.gmra.mrb[26].mxu0 %vm54_vm1, %v2003_v28 }
0x15a5   :  { %2663 = vmatprep.mubr.msk.f32.mxu0 %vm3080_vm0, %v3081_v6  ;;  %v1997_v41 = vmul.f32 %v3638_v31, %v1990_v42 }
0x15a7   :  { %v2004_v15 = vadd.f32 %v2001_v34, %v1997_v41  ;;  %v2267_v41 = vsub.s32 4, %v3581_v46 }
0x15a9   :  { %2664 = vmatmul.mubr.msk.f32.gmra.mrb[28].mxu0 %vm54_vm1, %v2004_v15 }
0x15eb   :  { %v2091_v43 = vpop.f32.mrb[24].mxu0 }
0x15ec   :  { %v2092_v57 = vadd.f32 %v2395_v14, %v2091_v43  ;;  %v2659_v10 = vpop.f32.mrb[25].mxu0 }
0x15ee   :  { %v2108_v56 = vmul.f32 0.70710677, %v2092_v57  ;;  %v2105_v12 = vmul.f32 0.5, %v2092_v57 }
0x15f0   :  { %3016 = verf.f32 %v2108_v56 }
0x15fa   :  { %v3017_v11 = vpop.eup %3016 }
0x15fb   :  { %v2114_v17 = vadd.f32 1.0, %v3017_v11 }
0x15fd   :  { %v2117_v19 = vmul.f32 %v2114_v17, %v2105_v12 }
0x15ff   :  { %2120 = vst [vmem:[#allocation5] sm:$0xff] %v2117_v19  ;;  %2699 = vmatmul.mubr.f32.vlgmr.msra.gmra.mrb[20].mxu1 %v2117_v19 }
0x1600   :  { %2701 = vmatprep.mubr.msk.f32.mxu1 %vm3080_vm0, %v3081_v6 }
0x1677   :  { %v2096_v21 = vpop.f32.mrb[26].mxu0 }
0x1678   :  { %v2097_v22 = vadd.f32 %v2395_v14, %v2096_v21  ;;  %v2662_v23 = vpop.f32.mrb[27].mxu0 }
0x167a   :  { %v2109_v24 = vmul.f32 0.70710677, %v2097_v22  ;;  %v2106_v32 = vmul.f32 0.5, %v2097_v22 }
0x167c   :  { %3018 = verf.f32 %v2109_v24  ;;  %v2101_v26 = vpop.f32.mrb[28].mxu0 }
0x167d   :  { %v2102_v29 = vadd.f32 %v2395_v14, %v2101_v26  ;;  %v2665_v44 = vpop.f32.mrb[29].mxu0  ;;  %v2268_v14 = vrot.slane %v3587_v48, %v2267_v41 }
0x167f   :  { %v2110_v30 = vmul.f32 0.70710677, %v2102_v29  ;;  %v2107_v37 = vmul.f32 0.5, %v2102_v29 }
0x1681   :  { %3020 = verf.f32 %v2110_v30 }
0x1686   :  { %v3019_v31 = vpop.eup %3018 }
0x1687   :  { %v2115_v33 = vadd.f32 1.0, %v3019_v31 }
0x1689   :  { %v2118_v34 = vmul.f32 %v2115_v33, %v2106_v32 }
0x168b   :  { %v3021_v35 = vpop.eup %3020  ;;  %2121 = vst [vmem:[#allocation5 + $0x8] sm:$0xff] %v2118_v34  ;;  %2702 = vmatmul.mubr.f32.gmra.mrb[22].mxu1 %v2118_v34 }
0x168c   :  { %v2116_v39 = vadd.f32 1.0, %v3021_v35  ;;  %2704 = vmatprep.mubr.msk.f32.mxu1 %vm3080_vm0, %v3081_v6 }
0x168e   :  { %v2119_v45 = vmul.f32 %v2116_v39, %v2107_v37 }
0x1690   :  { %2122 = vst [vmem:[#allocation5 + $0x10] sm:$0xff] %v2119_v45  ;;  %2705 = vmatmul.mubr.f32.gmra.mrb[24].mxu1 %v2119_v45 }
0x16d2   :  { %v2209_v47 = vpop.f32.mrb[20].mxu1 }
0x16d3   :  { %v2210_v49 = vadd.f32 %v2209_v47, %v2142_v16  ;;  %v2700_v50 = vpop.f32.mrb[21].mxu1 }
0x16d5   :  { %v2223_v51 = vadd.f32 %v2210_v49, %v3642_v36 }
0x16d7   :  { %v2226_v52 = vsel %vm54_vm1, %v2223_v51, 0.0 }
0x16d8   :  { %2227 = vadd.xlane.f32.xlu1 %v2226_v52 }
0x175e   :  { %v2214_v40 = vpop.f32.mrb[22].mxu1 }
0x175f   :  { %v2215_v38 = vadd.f32 %v2214_v40, %v2142_v16  ;;  %v2703_v53 = vpop.f32.mrb[23].mxu1 }
0x1761   :  { %v2224_v18 = vadd.f32 %v2215_v38, %v2003_v28 }
0x1763   :  { %v2219_v6 = vpop.f32.mrb[24].mxu1  ;;  %v2229_v54 = vsel %vm54_vm1, %v2224_v18, 0.0 }
0x1764   :  { %v2220_v55 = vadd.f32 %v2219_v6, %v2142_v16  ;;  %2230 = vadd.xlane.f32.xlu0 %v2229_v54  ;;  %v2706_v58 = vpop.f32.mrb[25].mxu1 }
0x1765   :  { %v2228_v59 = vpop.xlane.xlu1 %2227 }
0x1766   :  { %v2235_v60 = vmul.f32 0.03125, %v2228_v59  ;;  %v2225_v61 = vadd.f32 %v2220_v55, %v2004_v15  ;;  %v2274_v15 = vsub.s32 5, %v3581_v46 }
0x1768   :  { %v2238_v62 = vsub.f32 %v2223_v51, %v2235_v60  ;;  %v2232_v63 = vsel %vm54_vm1, %v2225_v61, 0.0  ;;  %v2275_v10 = vrot.slane %v3587_v48, %v2274_v15 }
0x1769   :  { %2233 = vadd.xlane.f32.xlu1 %v2232_v63 }
0x176a   :  { %v2241_v36 = vmul.f32 %v2238_v62, %v2238_v62 }
0x176c   :  { %v2244_v25 = vsel %vm54_vm1, %v2241_v36, 0.0 }
0x176d   :  { %2245 = vadd.xlane.f32.xlu0 %v2244_v25 }
0x17f1   :  { %v2231_v0 = vpop.xlane.xlu0 %2230 }
0x17f2   :  { %v2236_v1 = vmul.f32 0.03125, %v2231_v0 }
0x17f4   :  { %v2239_v2 = vsub.f32 %v2224_v18, %v2236_v1 }
0x17f6   :  { %v2234_v4 = vpop.xlane.xlu1 %2233  ;;  %v2242_v5 = vmul.f32 %v2239_v2, %v2239_v2 }
0x17f7   :  { %v2237_v7 = vmul.f32 0.03125, %v2234_v4 }
0x17f8   :  { %v2247_v13 = vsel %vm54_vm1, %v2242_v5, 0.0 }
0x17f9   :  { %v2240_v8 = vsub.f32 %v2225_v61, %v2237_v7  ;;  %2248 = vadd.xlane.f32.xlu1 %v2247_v13 }
0x17fa   :  { %v2246_v3 = vpop.xlane.xlu0 %2245 }
0x17fb   :  { %v2253_v9 = vmul.f32 0.03125, %v2246_v3  ;;  %v2243_v27 = vmul.f32 %v2240_v8, %v2240_v8 }
0x17fd   :  { %v2256_v28 = vadd.f32 1e-05, %v2253_v9  ;;  %v2250_v42 = vsel %vm54_vm1, %v2243_v27, 0.0 }
0x17fe   :  { %2251 = vadd.xlane.f32.xlu0 %v2250_v42 }
0x17ff   :  { %3022 = vrsqrt.f32 %v2256_v28 }
0x1809   :  { %v3023_v43 = vpop.eup %3022 }
0x180a   :  { %v2262_v57 = vmul.f32 %v3023_v43, %v2238_v62 }
0x180c   :  { %v2269_v56 = vmul.f32 %v2268_v14, %v2262_v57 }
0x180e   :  { %v2276_v11 = vadd.f32 %v2275_v10, %v2269_v56 }
0x1810   :  { %2279 = vst.msk [vmem:[#allocation3] sm:$0xff] %vm54_vm1, %v2276_v11 }
0x1811   :  { %3042 = shalt.err (!%p3039_p4)
}
0x1812   :  { %s3043_s10 = scalar_lea.hbm %s3775_s11, 384 }
0x1813   :  { %p3044_p5 = scmp.ne.s32.totalorder %s3775_s11, %s3043_s10  ;;  %p3047_p6 = scmp.lt.u32.totalorder %s3043_s10, %s3775_s11 }
0x1815   :  { %p3049_p7 = pnand %p3047_p6, %p3044_p5 }
0x1817   :  { %3052 = shalt.err (!%p3049_p7)
}
0x1818   :  { %s3098_s27 = smov 128   ;;  %s3099_s30 = smov [#allocation3]  }
0x1819   :  { %2307 = dma.vmem_to_hbm [thread:$0]  %s2302_s18, 384, %s3775_s11, [#allocation6], %s3098_s27, %s3098_s27, %s3094_s12  }
0x181a   :  { %s2287_s13 = sshll.u32 %s3099_s30, 4  ;;  %s2288_s13 = int_to_ptr.vmem [resolvable:$true] %s2287_s13 }
0x181b   :  { %s3053_s11 = scalar_lea.vmem %s2288_s13, 384  ;;  %p3058_p9 = scmp.lt.s32.totalorder %s2288_s13, %s2288_s13 }
0x181c   :  { %p3054_p8 = scmp.ne.s32.totalorder %s2288_s13, %s3053_s11  ;;  %p3059_p10 = scmp.lt.s32.totalorder %s3053_s11, %s3053_s11 }
0x181e   :  { %p3060_p11 = por %p3059_p10, %p3058_p9 }
0x1820   :  { %p3061_p12 = pnand %p3060_p11, %p3054_p8 }
0x1886   :  { %v2249_v46 = vpop.xlane.xlu1 %2248 }
0x1887   :  { %v2254_v48 = vmul.f32 0.03125, %v2249_v46 }
0x1889   :  { %v2257_v12 = vadd.f32 1e-05, %v2254_v48 }
0x188b   :  { %3024 = vrsqrt.f32 %v2257_v12  ;;  %v2252_v17 = vpop.xlane.xlu0 %2251 }
0x188c   :  { %v2255_v19 = vmul.f32 0.03125, %v2252_v17 }
0x188e   :  { %v2258_v21 = vadd.f32 1e-05, %v2255_v19 }
0x1890   :  { %3026 = vrsqrt.f32 %v2258_v21 }
0x1895   :  { %v3025_v22 = vpop.eup %3024 }
0x1896   :  { %v2263_v23 = vmul.f32 %v3025_v22, %v2239_v2 }
0x1898   :  { %v2270_v24 = vmul.f32 %v2268_v14, %v2263_v23 }
0x189a   :  { %v3027_v26 = vpop.eup %3026  ;;  %v2277_v29 = vadd.f32 %v2275_v10, %v2270_v24 }
0x189b   :  { %v2264_v44 = vmul.f32 %v3027_v26, %v2240_v8 }
0x189c   :  { %2280 = vst.msk [vmem:[#allocation3 + $0x8] sm:$0xff] %vm54_vm1, %v2277_v29 }
0x189d   :  { %v2271_v30 = vmul.f32 %v2268_v14, %v2264_v44 }
0x189f   :  { %v2278_v31 = vadd.f32 %v2275_v10, %v2271_v30 }
0x18a1   :  { %2281 = vst.msk [vmem:[#allocation3 + $0x10] sm:$0xff] %vm54_vm1, %v2278_v31 }
0x18a2   :  { %3064 = shalt.err (!%p3061_p12)
}
0x18a3   :  { %s3065_s1 = scalar_lea.hbm %s3773_s9, 384 }
0x18a4   :  { %p3066_p13 = scmp.ne.s32.totalorder %s3773_s9, %s3065_s1  ;;  %p3069_p0 = scmp.lt.u32.totalorder %s3065_s1, %s3773_s9 }
0x18a6   :  { %p3071_p1 = pnand %p3069_p0, %p3066_p13 }
0x18a8   :  { %3074 = shalt.err (!%p3071_p1)
}
0x18a9   :  { %2293 = dma.vmem_to_hbm [thread:$0]  %s2288_s13, 384, %s3773_s9, [#allocation4], %s3098_s27, %s3098_s27, %s3094_s12  }
0x18aa   :  { %3075 = dma.done.wait [#allocation4], 384  }
0x18ab   :  { %3076 = vsyncadd [#allocation4], 4294966912 }
0x18ac   :  { %3077 = dma.done.wait [#allocation6], 384  }
0x18ad   :  { %3078 = vsyncadd [#allocation6], 4294966912 }
0x18ae   :  { %2316 = vsyncpa [#allocation4], 1 }
0x18af   :  { %2317 = vsyncpa [#allocation6], 1 }

</bundles_post_ra>
